<compile_context>
chip_gen: v7x
topology: tpu7x:2x2x1
jax: 0.10.0
libtpu: 0.0.40
codegen_flags: <defaults>
</compile_context>

<pallas_src>
import jax
import jax.numpy as jnp
import numpy as np
from jax.experimental import pallas as pl
from jax.experimental.pallas import tpu as pltpu

N_EMBD = 320
HIDDEN = 4 * N_EMBD       # 1280
TN = 640                  # output-lane tile of the second matmul (multiple of 128)
N_TILES = HIDDEN // TN    # 2 grid steps
SUBLANE = 8               # f32 sublane tile


def time_embedding_kernel(t_ref, w1_ref, b1_ref, w2_ref, b2_ref, out_ref):
    """TimeEmbedding forward: Linear -> SiLU -> Linear.

    The grid axis tiles the second matmul's output lanes. The first matmul + SiLU is
    recomputed per step (cheap) so there is no cross-step state and the axis can be
    "parallel" (v7x megacore splits the w2 stream across both TensorCores).
    """
    # Linear_1 + SiLU (bf16 operands, f32 MXU accumulation, SiLU in f32 vregs).
    h = jnp.dot(t_ref[...], w1_ref[...], preferred_element_type=jnp.float32)
    h = h + b1_ref[...]
    h = h * jax.nn.sigmoid(h)
    h = h.astype(jnp.bfloat16)   # intentional bf16 rounding before the second matmul

    # Linear_2: one TN-lane output tile per grid step (w2 tile is a contiguous HBM block).
    o = jnp.dot(h, w2_ref[...], preferred_element_type=jnp.float32)
    out_ref[...] = (o + b2_ref[...]).astype(out_ref.dtype)


def time_embedding_pallas(time, w1, b1, w2, b2):
    """time: (B, 320) f32; w1: (320, 1280) bf16; b1: (1, 1280) f32;
    w2: (1280, 1280) bf16; b2: (1, 1280) f32 -> (B, 1280) f32."""
    B = time.shape[0]
    BP = ((B + SUBLANE - 1) // SUBLANE) * SUBLANE
    time_b = time.astype(jnp.bfloat16)
    if BP != B:
        time_b = jnp.pad(time_b, ((0, BP - B), (0, 0)))

    # Pre-tile w2 so each streamed tile is one contiguous HBM block:
    #   tile j == w2[:, j*TN:(j+1)*TN], stored as (N_TILES, HIDDEN, TN).
    # In a real pipeline this layout is prepared once with the weights (jit constant-folds it).
    w2_tiles = jnp.transpose(w2.reshape(HIDDEN, N_TILES, TN), (1, 0, 2))

    out = pl.pallas_call(
        time_embedding_kernel,
        out_shape=jax.ShapeDtypeStruct((BP, HIDDEN), jnp.float32),
        grid_spec=pltpu.PrefetchScalarGridSpec(
            num_scalar_prefetch=0,
            grid=(N_TILES,),
            in_specs=[
                pl.BlockSpec((BP, N_EMBD), lambda j: (0, 0)),            # time  (resident, bf16)
                pl.BlockSpec((N_EMBD, HIDDEN), lambda j: (0, 0)),        # w1    (resident)
                pl.BlockSpec((1, HIDDEN), lambda j: (0, 0)),             # b1    (resident)
                pl.BlockSpec((pl.Squeezed(), HIDDEN, TN),
                             lambda j: (j, 0, 0)),                       # w2    (contiguous tile stream)
                pl.BlockSpec((1, TN), lambda j: (0, j)),                 # b2    (tiny tile stream)
            ],
            out_specs=pl.BlockSpec((BP, TN), lambda j: (0, j)),          # lane-dense output tile
        ),
        compiler_params=pltpu.CompilerParams(
            dimension_semantics=("parallel",),       # no cross-step state -> megacore-splittable
            vmem_limit_bytes=12 * 1024 * 1024,
        ),
    )(time_b, w1, b1, w2_tiles, b2)
    return out[:B]


def init_params(key):
    """Deterministic parameter init mimicking PyTorch's default Linear init.

    Weights cast to bf16 (halves HBM traffic); biases kept f32.
    Stored as (in, out) == transpose of PyTorch's (out, in).
    """
    k1, k2, k3, k4 = jax.random.split(key, 4)
    lim1 = 1.0 / np.sqrt(N_EMBD)
    lim2 = 1.0 / np.sqrt(HIDDEN)
    w1 = jax.random.uniform(k1, (N_EMBD, HIDDEN), jnp.float32, -lim1, lim1).astype(jnp.bfloat16)
    b1 = jax.random.uniform(k2, (1, HIDDEN), jnp.float32, -lim1, lim1)
    w2 = jax.random.uniform(k3, (HIDDEN, HIDDEN), jnp.float32, -lim2, lim2).astype(jnp.bfloat16)
    b2 = jax.random.uniform(k4, (1, HIDDEN), jnp.float32, -lim2, lim2)
    return w1, b1, w2, b2


def diffusion_forward(latent, context, time, params):
    """Pallas translation of Diffusion.forward.

    Only the TimeEmbedding stage is defined in the reference source; UNET and
    UNET_OutputLayer are undefined there and therefore not translated.
    """
    w1, b1, w2, b2 = params
    t_emb = time_embedding_pallas(time, w1, b1, w2, b2)   # (B, 1280)
    # TODO(synk): output = UNET()(latent, context, t_emb)      -- class undefined in reference
    # TODO(synk): output = UNET_OutputLayer(320, 1)(output)    -- class undefined in reference
    return t_emb


def time_embedding_ref_mixed(time, w1, b1, w2, b2):
    """Reference mirroring the kernel's dtype choices (bf16 operands, f32 accumulation)."""
    h = jnp.dot(time.astype(jnp.bfloat16), w1, preferred_element_type=jnp.float32) + b1
    h = h * jax.nn.sigmoid(h)
    return jnp.dot(h.astype(jnp.bfloat16), w2, preferred_element_type=jnp.float32) + b2


def time_embedding_ref_f32(time, w1, b1, w2, b2):
    """Full-f32 reference (PyTorch semantics with the bf16-rounded weights)."""
    h = time @ w1.astype(jnp.float32) + b1
    h = h * jax.nn.sigmoid(h)
    return h @ w2.astype(jnp.float32) + b2


if __name__ == "__main__":
    key = jax.random.PRNGKey(0)
    k_lat, k_ctx, k_time, k_par = jax.random.split(key, 4)

    # Small shapes consistent with Diffusion.forward's signature.
    B = 2
    latent = jax.random.normal(k_lat, (B, 4, 16, 16), jnp.float32)   # NCHW latent
    context = jax.random.normal(k_ctx, (B, 8, 32), jnp.float32)      # (B, seq, d_context)
    time = jax.random.normal(k_time, (B, N_EMBD), jnp.float32)       # (B, 320)

    params = init_params(k_par)

    out = diffusion_forward(latent, context, time, params)
    out = jax.block_until_ready(out)

    ref_mixed = time_embedding_ref_mixed(time, *params)
    np.testing.assert_allclose(np.asarray(out), np.asarray(ref_mixed), rtol=2e-3, atol=2e-3)

    ref_f32 = time_embedding_ref_f32(time, *params)
    np.testing.assert_allclose(np.asarray(out), np.asarray(ref_f32), rtol=5e-2, atol=5e-2)

    print("KERNEL_OK")
</pallas_src>

<mosaic_0001>
module attributes {stable_mosaic.version = 11 : i64} {
  func.func @time_embedding_kernel(%arg0: i32, %arg1: memref<8x320xbf16, #tpu.memory_space<vmem>>, %arg2: memref<320x1280xbf16, #tpu.memory_space<vmem>>, %arg3: memref<1x1280xf32, #tpu.memory_space<vmem>>, %arg4: memref<1x1280x640xbf16, #tpu.memory_space<vmem>>, %arg5: memref<1x640xf32, #tpu.memory_space<vmem>>, %arg6: memref<8x640xf32, #tpu.memory_space<vmem>>) attributes {dimension_semantics = [#tpu.dimension_semantics<parallel>], iteration_bounds = array<i64: 2>, scalar_prefetch = 0 : i64, scratch_operands = 0 : i64, tpu.core_type = #tpu.core_type<tc>, window_params = [{pipeline_mode = #tpu.pipeline_mode<synchronous>, transform_indices = @transform_0, window_bounds = array<i64: 8, 320>}, {pipeline_mode = #tpu.pipeline_mode<synchronous>, transform_indices = @transform_1, window_bounds = array<i64: 320, 1280>}, {pipeline_mode = #tpu.pipeline_mode<synchronous>, transform_indices = @transform_2, window_bounds = array<i64: 1, 1280>}, {transform_indices = @transform_3, window_bounds = array<i64: 1, 1280, 640>}, {transform_indices = @transform_4, window_bounds = array<i64: 1, 640>}, {transform_indices = @transform_5, window_bounds = array<i64: 8, 640>}]} {
    %c0 = arith.constant 0 : index
    %c0_0 = arith.constant 0 : index
    %0 = vector.load %arg1[%c0, %c0_0] : memref<8x320xbf16, #tpu.memory_space<vmem>>, vector<8x320xbf16>
    %c0_1 = arith.constant 0 : index
    %c0_2 = arith.constant 0 : index
    %1 = vector.load %arg2[%c0_1, %c0_2] : memref<320x1280xbf16, #tpu.memory_space<vmem>>, vector<320x1280xbf16>
    %cst = arith.constant dense<0.000000e+00> : vector<8x1280xf32>
    %2 = tpu.matmul %0, %1, %cst {dimension_numbers = #tpu.dot_dimension_numbers<[1], [0], [0], [1], [0, 0, 1, 1], [], []>} : vector<8x320xbf16>, vector<320x1280xbf16>, vector<8x1280xf32> -> vector<8x1280xf32>
    %c0_3 = arith.constant 0 : index
    %c0_4 = arith.constant 0 : index
    %3 = vector.load %arg3[%c0_3, %c0_4] : memref<1x1280xf32, #tpu.memory_space<vmem>>, vector<1x1280xf32>
    %4 = vector.broadcast %3 : vector<1x1280xf32> to vector<8x1280xf32>
    %5 = arith.addf %2, %4 : vector<8x1280xf32>
    %6 = arith.negf %5 : vector<8x1280xf32>
    %7 = math.exp %6 : vector<8x1280xf32>
    %cst_5 = arith.constant 1.000000e+00 : f32
    %8 = vector.broadcast %cst_5 : f32 to vector<8x1280xf32>
    %9 = arith.addf %8, %7 : vector<8x1280xf32>
    %10 = arith.divf %8, %9 : vector<8x1280xf32>
    %11 = arith.mulf %5, %10 : vector<8x1280xf32>
    %12 = arith.truncf %11 : vector<8x1280xf32> to vector<8x1280xbf16>
    %c0_6 = arith.constant 0 : index
    %c0_7 = arith.constant 0 : index
    %c0_8 = arith.constant 0 : index
    %13 = vector.load %arg4[%c0_6, %c0_7, %c0_8] : memref<1x1280x640xbf16, #tpu.memory_space<vmem>>, vector<1x1280x640xbf16>
    %14 = vector.shape_cast %13 : vector<1x1280x640xbf16> to vector<1280x640xbf16>
    %cst_9 = arith.constant dense<0.000000e+00> : vector<8x640xf32>
    %15 = tpu.matmul %12, %14, %cst_9 {dimension_numbers = #tpu.dot_dimension_numbers<[1], [0], [0], [1], [0, 0, 1, 1], [], []>} : vector<8x1280xbf16>, vector<1280x640xbf16>, vector<8x640xf32> -> vector<8x640xf32>
    %c0_10 = arith.constant 0 : index
    %c0_11 = arith.constant 0 : index
    %16 = vector.load %arg5[%c0_10, %c0_11] : memref<1x640xf32, #tpu.memory_space<vmem>>, vector<1x640xf32>
    %17 = vector.broadcast %16 : vector<1x640xf32> to vector<8x640xf32>
    %18 = arith.addf %15, %17 : vector<8x640xf32>
    %c0_12 = arith.constant 0 : index
    %c0_13 = arith.constant 0 : index
    %19 = vector.load %arg6[%c0_12, %c0_13] : memref<8x640xf32, #tpu.memory_space<vmem>>, vector<8x640xf32>
    tpu.vector_store %arg6[%c0_12, %c0_13], %18 {strides = array<i32>} : memref<8x640xf32, #tpu.memory_space<vmem>>, vector<8x640xf32>,
    return
  }
  func.func @transform_0(%arg0: i32) -> (i32, i32) {
    %c0_i32 = arith.constant 0 : i32
    %c0_i32_0 = arith.constant 0 : i32
    %c0_i32_1 = arith.constant 0 : i32
    return %c0_i32, %c0_i32_0 : i32, i32
  }
  func.func @transform_1(%arg0: i32) -> (i32, i32) {
    %c0_i32 = arith.constant 0 : i32
    %c0_i32_0 = arith.constant 0 : i32
    %c0_i32_1 = arith.constant 0 : i32
    return %c0_i32, %c0_i32_0 : i32, i32
  }
  func.func @transform_2(%arg0: i32) -> (i32, i32) {
    %c0_i32 = arith.constant 0 : i32
    %c0_i32_0 = arith.constant 0 : i32
    %c0_i32_1 = arith.constant 0 : i32
    return %c0_i32, %c0_i32_0 : i32, i32
  }
  func.func @transform_3(%arg0: i32) -> (i32, i32, i32) {
    %c0_i32 = arith.constant 0 : i32
    %c0_i32_0 = arith.constant 0 : i32
    %c0_i32_1 = arith.constant 0 : i32
    return %arg0, %c0_i32, %c0_i32_0 : i32, i32, i32
  }
  func.func @transform_4(%arg0: i32) -> (i32, i32) {
    %c0_i32 = arith.constant 0 : i32
    %c0_i32_0 = arith.constant 0 : i32
    return %c0_i32, %arg0 : i32, i32
  }
  func.func @transform_5(%arg0: i32) -> (i32, i32) {
    %c0_i32 = arith.constant 0 : i32
    %c0_i32_0 = arith.constant 0 : i32
    return %c0_i32, %arg0 : i32, i32
  }
}

</mosaic_0001>

<bundles_post_ra>
// kernel: tpu_custom_call.1
= control target key start
LH: loop header
LB: loop body
LE: loop exit
PB: predicated region body
PF: predicated region fallthrough
CT: control target
= control target key end

     0   :  { %s8340_s0 = inlined_call_operand.hbm [shape: bf16[8,320], index: 0, kind: input, shape index: {}]   ;;  %s8341_s1 = inlined_call_operand.hbm [shape: bf16[320,1280], index: 1, kind: input, shape index: {}]   ;;  %s8342_s2 = inlined_call_operand.hbm [shape: f32[1,1280], index: 2, kind: input, shape index: {}]   ;;  %s8343_s3 = inlined_call_operand.hbm [shape: bf16[2,1280,640], index: 3, kind: input, shape index: {}]   ;;  %s8344_s4 = inlined_call_operand.hbm [shape: f32[1,1280], index: 4, kind: input, shape index: {}]   ;;  %s8345_s5 = inlined_call_operand.hbm [shape: f32[8,1280], index: 5, kind: output, shape index: {}]  }
   0x1   :  { %8359 = sst [smem:[#allocation19_spill]] %s8341_s1 }
   0x2   :  { %8360 = sst [smem:[#allocation20_spill]] %s8343_s3 }
   0x3   :  { %10 = vsyncpa [#allocation3], 0 }
   0x4   :  { %11 = vsyncpa [#allocation6], 0 }
   0x5   :  { %12 = vsyncpa [#allocation9], 0 }
   0x6   :  { %14 = vsyncpa [#allocation9 + $0x1], 0 }
   0x7   :  { %15 = vsyncpa [#allocation4], 0 }
   0x8   :  { %17 = vsyncpa [#allocation4 + $0x1], 0  ;;  %s7489_s18 = smov 0   ;;  %s7491_s19 = smov 0  }
   0x9   :  { %s7493_s20 = smov 0   ;;  %s7495_s21 = smov 0  }
   0xa LB: > { %s7510_s22 = sadd.s32 4294967295, %s7446_s21   ;;  %s5419_s23 = sadd.s32 4294967294, %s7446_s21   ;;  %s7446_s21 = sphi %s7495_s21, %s8389_s21   ;;  %s7442_s20 = sphi %s7493_s20, %s8393_s20   ;;  %s7438_s19 = sphi %s7491_s19, %s8392_s19   ;;  %s7434_s18 = sphi %s7489_s18, %s8391_s18  }
   0xb   : > { %p106_p0 = scmp.ne.s32.totalorder %s7438_s19, %s7434_s18  ;;  %p8346_p1 = scmp.eq.s32.totalorder %s7510_s22, 0 }
   0xc   : > { %p162_p3 = scmp.eq.s32.totalorder %s5419_s23, 1  ;;  %p5420_p5 = scmp.ge.s32.totalorder %s7446_s21, 1 }
   0xd   : > { %p7519_p4 = por %p8346_p1, %p106_p0  ;;  %p169_p7 = scmp.lt.s32.totalorder %s7446_s21, 3 }
   0xe   : > { %p7524_p6 = por %p162_p3, %p106_p0  ;;  %s7448_s27 = smov [#allocation5]  }
   0xf   : > { %s8361_s24 = scalar_select %p7519_p4, 1, 0 }
  0x10   : > { %s8362_s25 = scalar_select %p7524_p6, 1, 0 }
  0x11   : > { %p7529_p8 = pnand %p5420_p5, %p169_p7  ;;  %s192_s28 = sshll.u32 %s7448_s27, 4  ;;  %s7533_s28 = int_to_ptr.vmem [resolvable:$true] %s192_s28 }
  0x12   : > { %8363 = sst [smem:[#allocation16_spill]] %s8362_s25  ;;  %s7545_s30 = sadd.s32 1, %s7446_s21  }
  0x13   : > { %s8364_s26 = scalar_select %p7529_p8, 1, 0 }
  0x14   : > { %p6254_p9 = pneg %p7529_p8  ;;  %8366 = sst [smem:[#allocation17_spill]] %s7545_s30 }
  0x15   : > { %s93_s6 = sadd.s32 1, %s7442_s20  ;;  %s90_s7 = ssub.s32 %s7446_s21, %s7545_s30 }
  0x16   : > { %p7540_p11 = pnand %p6254_p9, %p8346_p1  ;;  %s8367_s1 = sld [smem:[#allocation19_spill]] }
  0x18   : > { %s8365_s29 = scalar_select %p7540_p11, 1, 0 }
  0x19   : > { %p7558_p13 = pneg %p7540_p11 }
  0x1c   : > { %s7228_s10 = scalar_lea.hbm %s8367_s1, 25600 }
  0x1d   : > { %p7229_p12 = scmp.ne.s32.totalorder %s8367_s1, %s7228_s10  ;;  %p7235_p5 = scmp.lt.u32.totalorder %s7228_s10, %s8367_s1 }
  0x1f   : > { %p7231_p0 = pnand %p7558_p13, %p7229_p12 }
  0x21   : > { %p7232_p3 = pneg %p7231_p0 }
  0x23   : > { %p7237_p7 = pnand %p7235_p5, %p7232_p3 }
  0x25   : > { %7240 = shalt.err (!%p7237_p7)
}
  0x26   : > { %s7241_s16 = scalar_lea.vmem %s7533_s28, 25600  ;;  %p7249_p2 = scmp.lt.s32.totalorder %s7533_s28, %s7533_s28 }
  0x27   : > { %p7242_p9 = scmp.ne.s32.totalorder %s7533_s28, %s7241_s16  ;;  %p7250_p6 = scmp.lt.s32.totalorder %s7241_s16, %s7241_s16 }
  0x29   : > { %p7244_p10 = pnand %p7242_p9, %p7558_p13  ;;  %p7251_p12 = por %p7250_p6, %p7249_p2 }
  0x2b   : > { %p7245_p1 = pneg %p7244_p10 }
  0x2d   : > { %p7252_p0 = pnand %p7251_p12, %p7245_p1 }
  0x2f   : > { %7255 = shalt.err (!%p7252_p0)
}
  0x30   : > { %s7449_s17 = smov 640   ;;  %s7450_s23 = smov 40  }
  0x31   : > { %6260 = dma.hbm_to_vmem [thread:$0]  (!%p7540_p11), %s8367_s1, 25600, %s7533_s28, [#allocation6], %s7449_s17, %s7449_s17, %s7450_s23  }
  0x32   : > { %p91_p1 = scmp.eq.s32.totalorder %s90_s7, 0  ;;  %p100_p2 = scmp.ne.s32.totalorder %s7442_s20, %s7438_s19 }
  0x33   : > { %p101_p6 = scmp.eq.s32.totalorder %s7446_s21, 0  ;;  %p6278_p10 = scmp.lt.s32.totalorder %s7446_s21, 2 }
  0x34   : > { %s7584_s9 = scalar_select %p91_p1, %s7442_s20, %s93_s6  }
  0x35   : > { %p102_p3 = por %p101_p6, %p100_p2  ;;  %p8370_p5 = scmp.eq.s32.totalorder %s7510_s22, 1 }
  0x36   : > { %8369 = sst [smem:[#allocation18_spill]] %s7584_s9  ;;  %s217_s11 = sand.u32 1, %s7446_s21  }
  0x37   : > { %p7588_p7 = por %p8370_p5, %p100_p2  ;;  %s8347_s12 = sand.u32 1, %s7442_s20  }
  0x38   : > { %s6230_s14 = smul.u32 3200, %s8347_s12  ;;  %p7597_p9 = pnand %p6278_p10, %p102_p3 }
  0x39   : > { %s8371_s10 = scalar_select %p7588_p7, 1, 0 }
  0x3a   : > { %s6231_s15 = smul.u32 51200, %s7446_s21  ;;  %s8373_s3 = sld [smem:[#allocation20_spill]] }
  0x3b   : > { %s8372_s16 = scalar_select %p7597_p9, 1, 0 }
  0x3c   : > { %s221_s17 = scalar_lea.vmem [#allocation8], %s6230_s14  ;;  %s7608_s27 = scalar_lea.sflag [#allocation9], %s217_s11 }
  0x3d   : > { %s228_s23 = sshll.u32 %s221_s17, 4  ;;  %p8356_p0 = pneg %p7597_p9  ;;  %s7606_s23 = int_to_ptr.vmem [resolvable:$true] %s228_s23 }
  0x40   : > { %s7604_s6 = scalar_lea.hbm %s8373_s3, %s6231_s15  ;;  %s7261_s7 = scalar_lea.hbm %s8373_s3, 102400 }
  0x41   : > { %s7256_s8 = scalar_lea.hbm %s7604_s6, 51200  ;;  %p7262_p6 = scmp.lt.u32.totalorder %s7604_s6, %s8373_s3 }
  0x42   : > { %p7257_p12 = scmp.ne.s32.totalorder %s7604_s6, %s7256_s8  ;;  %p7263_p10 = scmp.lt.u32.totalorder %s7261_s7, %s7256_s8 }
  0x43   : > { %p7265_p5 = scmp.lt.u32.totalorder %s7256_s8, %s7604_s6 }
  0x44   : > { %p7259_p1 = pnand %p8356_p0, %p7257_p12  ;;  %p7264_p3 = por %p7263_p10, %p7262_p6 }
  0x46   : > { %p7260_p2 = pneg %p7259_p1  ;;  %p7266_p7 = por %p7265_p5, %p7264_p3 }
  0x48   : > { %p7267_p4 = pnand %p7266_p7, %p7260_p2 }
  0x4a   : > { %7270 = shalt.err (!%p7267_p4)
}
  0x4b   : > { %s7271_s11 = scalar_lea.vmem %s7606_s23, 51200  ;;  %s7451_s14 = smov [#allocation8]  }
  0x4c   : > { %p7272_p12 = scmp.ne.s32.totalorder %s7606_s23, %s7271_s11  ;;  %s7276_s17 = sshll.u32 %s7451_s14, 4  ;;  %s7277_s17 = int_to_ptr.vmem [resolvable:$false] %s7276_s17 }
  0x4d   : > { %s7278_s1 = scalar_lea.vmem %s7277_s17, 102400  ;;  %p7279_p11 = scmp.lt.s32.totalorder %s7606_s23, %s7277_s17 }
  0x4e   : > { %p7274_p1 = pnand %p7272_p12, %p8356_p0  ;;  %p7280_p6 = scmp.lt.s32.totalorder %s7278_s1, %s7271_s11 }
  0x50   : > { %p7275_p8 = pneg %p7274_p1  ;;  %p7281_p10 = por %p7280_p6, %p7279_p11 }
  0x52   : > { %p7282_p3 = pnand %p7281_p10, %p7275_p8 }
  0x54   : > { %7285 = shalt.err (!%p7282_p3)
}
  0x55   : > { %s7452_s12 = smov 320   ;;  %s7453_s8 = smov 20  }
  0x56   : > { %6267 = dma.hbm_to_vmem [thread:$0]  (!%p7597_p9), %s7604_s6, 51200, %s7606_s23, %s7608_s27, %s7452_s12, %s7452_s12, %s7453_s8  }
  0x57   : > { %s7454_s15 = smov [#allocation2]   ;;  %s7455_s7 = smov [#allocation7]  }
  0x58   : > { %s182_s28 = sshll.u32 %s7454_s15, 4  ;;  %s206_s14 = sshll.u32 %s7455_s7, 4  ;;  %s183_s28 = int_to_ptr.vmem [resolvable:$true] %s182_s28  ;;  %s207_s14 = int_to_ptr.vmem [resolvable:$true] %s206_s14 }
  0x59   : > { %s7286_s11 = scalar_lea.hbm %s8340_s0, 192 }
  0x5a   : > { %p7287_p4 = scmp.ne.s32.totalorder %s8340_s0, %s7286_s11  ;;  %p7293_p7 = scmp.lt.u32.totalorder %s7286_s11, %s8340_s0 }
  0x5c   : > { %p7289_p8 = pnand %p7287_p4, %p7558_p13 }
  0x5e   : > { %p7290_p11 = pneg %p7289_p8 }
  0x60   : > { %p7295_p2 = pnand %p7293_p7, %p7290_p11 }
  0x62   : > { %7298 = shalt.err (!%p7295_p2)
}
  0x63   : > { %s7299_s6 = scalar_lea.vmem %s183_s28, 192  ;;  %p7307_p6 = scmp.lt.s32.totalorder %s183_s28, %s183_s28 }
  0x64   : > { %p7300_p5 = scmp.ne.s32.totalorder %s183_s28, %s7299_s6  ;;  %p7308_p10 = scmp.lt.s32.totalorder %s7299_s6, %s7299_s6 }
  0x66   : > { %p7302_p12 = pnand %p7300_p5, %p7558_p13  ;;  %p7309_p3 = por %p7308_p10, %p7307_p6 }
  0x68   : > { %p7303_p1 = pneg %p7302_p12 }
  0x6a   : > { %p7310_p0 = pnand %p7309_p3, %p7303_p1 }
  0x6c   : > { %7313 = shalt.err (!%p7310_p0)
}
  0x6d   : > { %p8374_p4 = scmp.ne.s32.totalorder %s8365_s29, 0  ;;  %s8375_s25 = sand.u32 1, %s7442_s20  }
  0x6e   : > { %s6232_s30 = smul.u32 5, %s8375_s25  ;;  %s7314_s8 = scalar_lea.hbm %s8342_s2, 160 }
  0x6f   : > { %6257 = dma.hbm_to_vmem [thread:$0]  (!%p8374_p4), %s8340_s0, 192, %s183_s28, [#allocation3]  }
  0x70   : > { %p7315_p8 = scmp.ne.s32.totalorder %s8342_s2, %s7314_s8  ;;  %p7321_p7 = scmp.lt.u32.totalorder %s7314_s8, %s8342_s2 }
  0x72   : > { %p7317_p0 = pnand %p7315_p8, %p7558_p13 }
  0x74   : > { %p7318_p11 = pneg %p7317_p0 }
  0x76   : > { %p7323_p2 = pnand %p7321_p7, %p7318_p11 }
  0x78   : > { %7326 = shalt.err (!%p7323_p2)
}
  0x79   : > { %s7327_s28 = scalar_lea.vmem %s207_s14, 160  ;;  %p7335_p6 = scmp.lt.s32.totalorder %s207_s14, %s207_s14 }
  0x7a   : > { %p7328_p5 = scmp.ne.s32.totalorder %s207_s14, %s7327_s28  ;;  %p7336_p10 = scmp.lt.s32.totalorder %s7327_s28, %s7327_s28 }
  0x7c   : > { %p7330_p12 = pnand %p7328_p5, %p7558_p13  ;;  %p7337_p3 = por %p7336_p10, %p7335_p6 }
  0x7e   : > { %p7331_p1 = pneg %p7330_p12 }
  0x80   : > { %p7338_p9 = pnand %p7337_p3, %p7331_p1 }
  0x82   : > { %7341 = shalt.err (!%p7338_p9)
}
  0x83   : > { %6263 = dma.hbm_to_vmem [thread:$0]  (!%p8374_p4), %s8342_s2, 160, %s207_s14, [#allocation6]  }
  0x84   : > { %s6052_s3 = smul.u32 80, %s7446_s21  ;;  %s242_s9 = scalar_lea.vmem [#allocation10], %s6232_s30 }
  0x85   : > { %s250_s25 = sshll.u32 %s242_s9, 4  ;;  %p8376_p8 = scmp.ne.s32.totalorder %s8372_s16, 0  ;;  %s251_s25 = int_to_ptr.vmem [resolvable:$true] %s250_s25 }
  0x86   : > { %s248_s12 = scalar_lea.hbm %s8344_s4, %s6052_s3  ;;  %s7347_s7 = scalar_lea.hbm %s8344_s4, 160 }
  0x87   : > { %s7342_s8 = scalar_lea.hbm %s248_s12, 80  ;;  %p8377_p9 = pneg %p8376_p8 }
  0x88   : > { %p7343_p13 = scmp.ne.s32.totalorder %s248_s12, %s7342_s8  ;;  %p7348_p4 = scmp.lt.u32.totalorder %s248_s12, %s8344_s4 }
  0x89   : > { %p7349_p7 = scmp.lt.u32.totalorder %s7347_s7, %s7342_s8  ;;  %p7351_p5 = scmp.lt.u32.totalorder %s7342_s8, %s248_s12 }
  0x8a   : > { %p7345_p0 = pnand %p7343_p13, %p8377_p9 }
  0x8b   : > { %p7350_p2 = por %p7349_p7, %p7348_p4 }
  0x8c   : > { %p7346_p11 = pneg %p7345_p0 }
  0x8d   : > { %p7352_p12 = por %p7351_p5, %p7350_p2 }
  0x8f   : > { %p7353_p1 = pnand %p7352_p12, %p7346_p11 }
  0x91   : > { %7356 = shalt.err (!%p7353_p1)
}
  0x92   : > { %s7357_s30 = scalar_lea.vmem %s251_s25, 80  ;;  %p8378_p10 = pmov %p8377_p9 }
  0x93   : > { %p7358_p6 = scmp.ne.s32.totalorder %s251_s25, %s7357_s30  ;;  %s7456_s11 = smov [#allocation10]  }
  0x94   : > { %s7362_s28 = sshll.u32 %s7456_s11, 4  ;;  %s7363_s28 = int_to_ptr.vmem [resolvable:$false] %s7362_s28 }
  0x95   : > { %p7360_p3 = pnand %p7358_p6, %p8378_p10  ;;  %s7364_s1 = scalar_lea.vmem %s7363_s28, 160 }
  0x96   : > { %p7365_p9 = scmp.lt.s32.totalorder %s251_s25, %s7363_s28  ;;  %p7366_p0 = scmp.lt.s32.totalorder %s7364_s1, %s7357_s30 }
  0x97   : > { %p7361_p13 = pneg %p7360_p3 }
  0x98   : > { %p7367_p4 = por %p7366_p0, %p7365_p9 }
  0x9a   : > { %p7368_p7 = pnand %p7367_p4, %p7361_p13 }
  0x9c   : > { %7371 = shalt.err (!%p7368_p7)
}
  0x9d   : > { %6270 = dma.hbm_to_vmem [thread:$0]  (!%p8376_p8), %s248_s12, 80, %s251_s25, %s7608_s27  }
  0x9e   : > { %p8379_p11 = scmp.ne.s32.totalorder %s8364_s26, 0 }
  0x9f   : > { %p8380_p2 = scmp.eq.s32.totalorder (!%p8379_p11), %s7510_s22, 0 }
  0xa0   : > { %259 = sbr.rel (%p8379_p11) target bundleno = 1118 (0x45e), region = 40 }
  0xa7   : > { %7417 = dma.done.wait (%p8380_p2), [#allocation3], 192   ;;  %p8381_p5 = pmov %p8380_p2 }
  0xa8   : > { %p8382_p12 = pmov %p8380_p2 }
  0xa9   : > { %7419 = vsyncadd (%p8381_p5), [#allocation3], 4294967104 }
  0xaa   : > { %7421 = dma.done.wait (%p8382_p12), [#allocation6], 25760   ;;  %p8383_p1 = pmov %p8380_p2 }
  0xab   : > { %s273_s16 = sand.u32 1, %s7510_s22   ;;  %s7705_s27 = sand.u32 1, %s7438_s19  }
  0xac   : > { %7423 = vsyncadd (%p8383_p1), [#allocation6], 4294941536  ;;  %s6233_s26 = smul.u32 3200, %s7705_s27  ;;  %s274_s6 = scalar_lea.sflag [#allocation9], %s273_s16 }
  0xad   : > { %p8384_p8 = scmp.ne.s32.totalorder %s8361_s24, 0 }
  0xae   : > { %s7708_s3 = scalar_lea.vmem [#allocation8], %s6233_s26 }
  0xaf   : > { %7425 = dma.done.wait (%p8384_p8), %s274_s6, 51280  }
  0xb0   : > { %7427 = vsyncadd (%p8384_p8), %s274_s6, 4294916016  ;;  %v6323_v0 = vld [vmem:[#allocation5 + $0x4] ss:$40 sps:$4 sm:$0xff]   ;;  %v6325_v1 = vld [vmem:[#allocation5] ss:$40 sps:$4 sm:$0xff]   ;;  %vm1587_vm0 = vcmask 523264  }
  0xb1   : > { %1591 = vmatprep.subr.bf16.mxu0 %v6323_v0  ;;  %v6326_v2 = vld [vmem:[#allocation5 + $0x54] ss:$40 sps:$4 sm:$0xff]   ;;  %v6328_v3 = vld [vmem:[#allocation5 + $0x50] ss:$40 sps:$4 sm:$0xff]   ;;  %v6329_v4 = vld [vmem:[#allocation5 + $0xa4] ss:$40 sps:$4 sm:$0xff]  }
  0xb2   : > { %1592 = vmatpush1.bf16.msra.mxu0 %v6325_v1  ;;  %v6331_v5 = vld [vmem:[#allocation5 + $0xa0] ss:$40 sps:$4 sm:$0xff]   ;;  %v6332_v6 = vld [vmem:[#allocation5 + $0xf4] ss:$40 sps:$4 sm:$0xff]   ;;  %v6334_v9 = vld [vmem:[#allocation5 + $0xf0] ss:$40 sps:$4 sm:$0xff]  }
  0xb3   : > { %1593 = vmatprep.subr.bf16.mxu0 %v6326_v2  ;;  %v6341_v7 = vld [vmem:[#allocation5 + $0xc] ss:$40 sps:$4 sm:$0xff]   ;;  %v6343_v8 = vld [vmem:[#allocation5 + $0x8] ss:$40 sps:$4 sm:$0xff]   ;;  %v6347_v10 = vld [vmem:[#allocation5 + $0x5c] ss:$40 sps:$4 sm:$0xff]  }
  0xb4   : > { %1673 = vmatprep.subr.bf16.mxu1 %v6341_v7  ;;  %v6349_v11 = vld [vmem:[#allocation5 + $0x58] ss:$40 sps:$4 sm:$0xff]   ;;  %v6335_v12 = vld [vmem:[#allocation5 + $0x144] ss:$40 sps:$4 sm:$0xff]   ;;  %v6338_v15 = vld [vmem:[#allocation5 + $0x194] ss:$40 sps:$4 sm:$0xff]  }
  0xb5   : > { %1674 = vmatpush1.bf16.msra.mxu1 %v6343_v8  ;;  %v6337_v13 = vld [vmem:[#allocation5 + $0x140] ss:$40 sps:$4 sm:$0xff]   ;;  %v6353_v14 = vld [vmem:[#allocation5 + $0xac] ss:$40 sps:$4 sm:$0xff]   ;;  %v6359_v17 = vld [vmem:[#allocation5 + $0xfc] ss:$40 sps:$4 sm:$0xff]  }
  0xb6   : > { %1594 = vmatpush1.bf16.msra.mxu0 %v6328_v3  ;;  %1675 = vmatprep.subr.bf16.mxu1 %v6347_v10  ;;  %v6355_v16 = vld [vmem:[#allocation5 + $0xa8] ss:$40 sps:$4 sm:$0xff]   ;;  %v6344_v19 = vld [vmem:[#allocation5 + $0x1e4] ss:$40 sps:$4 sm:$0xff]   ;;  %v6361_v20 = vld [vmem:[#allocation5 + $0xf8] ss:$40 sps:$4 sm:$0xff]  }
  0xb7   : > { %1595 = vmatprep.subr.bf16.mxu0 %v6329_v4  ;;  %v6340_v18 = vld [vmem:[#allocation5 + $0x190] ss:$40 sps:$4 sm:$0xff]   ;;  %v6365_v21 = vld [vmem:[#allocation5 + $0x14c] ss:$40 sps:$4 sm:$0xff]   ;;  %v6346_v22 = vld [vmem:[#allocation5 + $0x1e0] ss:$40 sps:$4 sm:$0xff]  }
  0xb8   : > { %v6350_v23 = vld [vmem:[#allocation5 + $0x234] ss:$40 sps:$4 sm:$0xff]   ;;  %v6367_v24 = vld [vmem:[#allocation5 + $0x148] ss:$40 sps:$4 sm:$0xff]   ;;  %v6356_v27 = vld [vmem:[#allocation5 + $0x284] ss:$40 sps:$4 sm:$0xff]  }
  0xb9   : > { %1676 = vmatpush1.bf16.msra.mxu1 %v6349_v11  ;;  %v6371_v25 = vld [vmem:[#allocation5 + $0x19c] ss:$40 sps:$4 sm:$0xff]   ;;  %v6352_v26 = vld [vmem:[#allocation5 + $0x230] ss:$40 sps:$4 sm:$0xff]   ;;  %v6377_v29 = vld [vmem:[#allocation5 + $0x1ec] ss:$40 sps:$4 sm:$0xff]  }
  0xba   : > { %1596 = vmatpush1.bf16.msra.mxu0 %v6331_v5  ;;  %1677 = vmatprep.subr.bf16.mxu1 %v6353_v14  ;;  %v6373_v28 = vld [vmem:[#allocation5 + $0x198] ss:$40 sps:$4 sm:$0xff]   ;;  %v6362_v31 = vld [vmem:[#allocation5 + $0x2d4] ss:$40 sps:$4 sm:$0xff]   ;;  %v6379_v32 = vld [vmem:[#allocation5 + $0x1e8] ss:$40 sps:$4 sm:$0xff]  }
  0xbb   : > { %1597 = vmatprep.subr.bf16.mxu0 %v6332_v6  ;;  %v6358_v30 = vld [vmem:[#allocation5 + $0x280] ss:$40 sps:$4 sm:$0xff]   ;;  %v6383_v33 = vld [vmem:[#allocation5 + $0x23c] ss:$40 sps:$4 sm:$0xff]   ;;  %v6364_v34 = vld [vmem:[#allocation5 + $0x2d0] ss:$40 sps:$4 sm:$0xff]  }
  0xbc   : > { %v6368_v35 = vld [vmem:[#allocation5 + $0x324] ss:$40 sps:$4 sm:$0xff]   ;;  %v6385_v36 = vld [vmem:[#allocation5 + $0x238] ss:$40 sps:$4 sm:$0xff]   ;;  %v6374_v41 = vld [vmem:[#allocation5 + $0x374] ss:$40 sps:$4 sm:$0xff]  }
  0xbd   : > { %1678 = vmatpush1.bf16.msra.mxu1 %v6355_v16  ;;  %v6389_v37 = vld [vmem:[#allocation5 + $0x28c] ss:$40 sps:$4 sm:$0xff]   ;;  %v6370_v40 = vld [vmem:[#allocation5 + $0x320] ss:$40 sps:$4 sm:$0xff]   ;;  %v6395_v43 = vld [vmem:[#allocation5 + $0x2dc] ss:$40 sps:$4 sm:$0xff]  }
  0xbe   : > { %1598 = vmatpush1.bf16.msra.mxu0 %v6334_v9  ;;  %1679 = vmatprep.subr.bf16.mxu1 %v6359_v17  ;;  %v321_v38 = vld [vmem:[#allocation2] sm:$0xff]  ;;  %v6391_v42 = vld [vmem:[#allocation5 + $0x288] ss:$40 sps:$4 sm:$0xff]   ;;  %v6380_v45 = vld [vmem:[#allocation5 + $0x3c4] ss:$40 sps:$4 sm:$0xff]   ;;  %v7457_v6 = vmov 0  }
  0xbf   : > { %1599 = vmatprep.subr.bf16.mxu0 %v6335_v12  ;;  %v7714_v39 = vcombine.high %v321_v38, %v321_v38  ;;  %v6376_v44 = vld [vmem:[#allocation5 + $0x370] ss:$40 sps:$4 sm:$0xff]   ;;  %v6401_v47 = vld [vmem:[#allocation5 + $0x32c] ss:$40 sps:$4 sm:$0xff]   ;;  %v6382_v48 = vld [vmem:[#allocation5 + $0x3c0] ss:$40 sps:$4 sm:$0xff]   ;;  %v7718_v0 = vcombine.low %v321_v38, %v321_v38 }
  0xc0   : > { %v6397_v46 = vld [vmem:[#allocation5 + $0x2d8] ss:$40 sps:$4 sm:$0xff]   ;;  %v6403_v49 = vld [vmem:[#allocation5 + $0x328] ss:$40 sps:$4 sm:$0xff]   ;;  %v6386_v50 = vld [vmem:[#allocation5 + $0x414] ss:$40 sps:$4 sm:$0xff]  }
  0xc1   : > { %1680 = vmatpush1.bf16.msra.mxu1 %v6361_v20  ;;  %1623 = vmatprep.mubr.bf16.mxu0 %v7714_v39  ;;  %v6409_v51 = vld [vmem:[#allocation5 + $0x37c] ss:$40 sps:$4 sm:$0xff]   ;;  %v6388_v52 = vld [vmem:[#allocation5 + $0x410] ss:$40 sps:$4 sm:$0xff]   ;;  %v6415_v55 = vld [vmem:[#allocation5 + $0x3cc] ss:$40 sps:$4 sm:$0xff]  }
  0xc2   : > { %1600 = vmatpush1.bf16.msra.mxu0 %v6337_v13  ;;  %1681 = vmatprep.subr.bf16.mxu1 %v6365_v21  ;;  %v6411_v53 = vld [vmem:[#allocation5 + $0x378] ss:$40 sps:$4 sm:$0xff]   ;;  %v6392_v54 = vld [vmem:[#allocation5 + $0x464] ss:$40 sps:$4 sm:$0xff]   ;;  %v6417_v57 = vld [vmem:[#allocation5 + $0x3c8] ss:$40 sps:$4 sm:$0xff]  }
  0xc3   : > { %1601 = vmatprep.subr.bf16.mxu0 %v6338_v15  ;;  %1705 = vmatprep.mubr.bf16.mxu1 %v7714_v39  ;;  %v6394_v56 = vld [vmem:[#allocation5 + $0x460] ss:$40 sps:$4 sm:$0xff]   ;;  %v6398_v58 = vld [vmem:[#allocation5 + $0x4b4] ss:$40 sps:$4 sm:$0xff]   ;;  %v6400_v60 = vld [vmem:[#allocation5 + $0x4b0] ss:$40 sps:$4 sm:$0xff]  }
  0xc4   : > { %v6421_v59 = vld [vmem:[#allocation5 + $0x41c] ss:$40 sps:$4 sm:$0xff]   ;;  %v6423_v61 = vld [vmem:[#allocation5 + $0x418] ss:$40 sps:$4 sm:$0xff]   ;;  %v6427_v63 = vld [vmem:[#allocation5 + $0x46c] ss:$40 sps:$4 sm:$0xff]  }
  0xc5   : > { %1682 = vmatpush1.bf16.msra.mxu1 %v6367_v24  ;;  %v6407_v62 = vld [vmem:[#allocation5 + $0x504] ss:$40 sps:$4 sm:$0xff]   ;;  %v6405_v1 = vld [vmem:[#allocation5 + $0x500] ss:$40 sps:$4 sm:$0xff]   ;;  %v6414_v2 = vld [vmem:[#allocation5 + $0x554] ss:$40 sps:$4 sm:$0xff]  }
  0xc6   : > { %1602 = vmatpush1.bf16.msra.mxu0 %v6340_v18  ;;  %1683 = vmatprep.subr.bf16.mxu1 %v6371_v25  ;;  %v6429_v3 = vld [vmem:[#allocation5 + $0x468] ss:$40 sps:$4 sm:$0xff]   ;;  %v6431_v4 = vld [vmem:[#allocation5 + $0x4bc] ss:$40 sps:$4 sm:$0xff]   ;;  %v6433_v8 = vld [vmem:[#allocation5 + $0x4b8] ss:$40 sps:$4 sm:$0xff]  }
  0xc7   : > { %1603 = vmatprep.subr.bf16.mxu0 %v6344_v19  ;;  %v6412_v5 = vld [vmem:[#allocation5 + $0x550] ss:$40 sps:$4 sm:$0xff]   ;;  %v6420_v7 = vld [vmem:[#allocation5 + $0x5a4] ss:$40 sps:$4 sm:$0xff]   ;;  %v6418_v10 = vld [vmem:[#allocation5 + $0x5a0] ss:$40 sps:$4 sm:$0xff]  }
  0xc8   : > { %v6436_v9 = vld [vmem:[#allocation5 + $0x50c] ss:$40 sps:$4 sm:$0xff]   ;;  %v6434_v12 = vld [vmem:[#allocation5 + $0x508] ss:$40 sps:$4 sm:$0xff]   ;;  %v6442_v13 = vld [vmem:[#allocation5 + $0x55c] ss:$40 sps:$4 sm:$0xff]  }
  0xc9   : > { %1684 = vmatpush1.bf16.msra.mxu1 %v6373_v28  ;;  %v6426_v11 = vld [vmem:[#allocation5 + $0x5f4] ss:$40 sps:$4 sm:$0xff]   ;;  %v6424_v14 = vld [vmem:[#allocation5 + $0x5f0] ss:$40 sps:$4 sm:$0xff]   ;;  %v6445_v20 = vld [vmem:[#allocation5 + $0x64] ss:$40 sps:$4 sm:$0xff]  }
  0xca   : > { %1604 = vmatpush1.bf16.msra.mxu0 %v6346_v22  ;;  %1685 = vmatprep.subr.bf16.mxu1 %v6377_v29  ;;  %v6439_v15 = vld [vmem:[#allocation5 + $0x14] ss:$40 sps:$4 sm:$0xff]   ;;  %v6440_v16 = vld [vmem:[#allocation5 + $0x558] ss:$40 sps:$4 sm:$0xff]   ;;  %v6446_v21 = vld [vmem:[#allocation5 + $0x5a8] ss:$40 sps:$4 sm:$0xff]  }
  0xcb   : > { %1605 = vmatprep.subr.bf16.mxu0 %v6350_v23  ;;  %v6448_v17 = vld [vmem:[#allocation5 + $0x5ac] ss:$40 sps:$4 sm:$0xff]   ;;  %v7724_v18 = vld [vmem:[#allocation2 + $0x8] ss:$0 sps:$4 sm:$0xff]   ;;  %v6437_v19 = vld [vmem:[#allocation5 + $0x10] ss:$40 sps:$4 sm:$0xff]  }
  0xcc   : > { %v6454_v22 = vld [vmem:[#allocation5 + $0x5fc] ss:$40 sps:$4 sm:$0xff]   ;;  %v6443_v23 = vld [vmem:[#allocation5 + $0x60] ss:$40 sps:$4 sm:$0xff]   ;;  %v6508_v38 = vld [vmem:[#allocation5 + $0x10c] ss:$40 sps:$4 sm:$0xff]  }
  0xcd   : > { %1686 = vmatpush1.bf16.msra.mxu1 %v6379_v32  ;;  %v6451_v24 = vld [vmem:[#allocation5 + $0xb4] ss:$40 sps:$4 sm:$0xff]   ;;  %v6452_v25 = vld [vmem:[#allocation5 + $0x5f8] ss:$40 sps:$4 sm:$0xff]   ;;  %v6457_v28 = vld [vmem:[#allocation5 + $0x104] ss:$40 sps:$4 sm:$0xff]  }
  0xce   : > { %1606 = vmatpush1.bf16.msra.mxu0 %v6352_v26  ;;  %1687 = vmatprep.subr.bf16.mxu1 %v6383_v33  ;;  %v6490_v26 = vld [vmem:[#allocation5 + $0x1c] ss:$40 sps:$4 sm:$0xff]   ;;  %v6488_v29 = vld [vmem:[#allocation5 + $0x18] ss:$40 sps:$4 sm:$0xff]   ;;  %v6494_v33 = vld [vmem:[#allocation5 + $0x68] ss:$40 sps:$4 sm:$0xff]  }
  0xcf   : > { %1607 = vmatprep.subr.bf16.mxu0 %v6356_v27  ;;  %v6449_v27 = vld [vmem:[#allocation5 + $0xb0] ss:$40 sps:$4 sm:$0xff]   ;;  %v6460_v32 = vld [vmem:[#allocation5 + $0x154] ss:$40 sps:$4 sm:$0xff]   ;;  %s6234_s24 = smul.u32 5, %s7705_s27  ;;  %s5284_s7 = scalar_lea.sflag [#allocation4], %s7705_s27 }
  0xd0   : > { %s6235_s25 = smul.u32 40, %s7705_s27  ;;  %p8385_p10 = scmp.ne.s32.totalorder %s8371_s10, 0 }
  0xd1   : > { %1688 = vmatpush1.bf16.msra.mxu1 %v6385_v36  ;;  %v6463_v36 = vld [vmem:[#allocation5 + $0x1a4] ss:$40 sps:$4 sm:$0xff]   ;;  %s286_s9 = scalar_lea.vmem [#allocation10], %s6234_s24  ;;  %s6053_s13 = smul.u32 640, %s7510_s22 }
  0xd2   : > { %1608 = vmatpush1.bf16.msra.mxu0 %v6358_v30  ;;  %1689 = vmatprep.subr.bf16.mxu1 %v6389_v37  ;;  %v6496_v30 = vld [vmem:[#allocation5 + $0x6c] ss:$40 sps:$4 sm:$0xff]   ;;  %v6500_v37 = vld [vmem:[#allocation5 + $0xb8] ss:$40 sps:$4 sm:$0xff]   ;;  %s8282_s23 = scalar_lea.vmem [#allocation11], %s6235_s25  ;;  %s7458_s22 = smov [#allocation11]  }
  0xd3   : > { %1609 = vmatprep.subr.bf16.mxu0 %v6362_v31  ;;  %v6455_v31 = vld [vmem:[#allocation5 + $0x100] ss:$40 sps:$4 sm:$0xff]   ;;  %s5298_s12 = sshll.u32 %s8282_s23, 4  ;;  %s8295_s15 = scalar_lea.hbm %s8345_s5, %s6053_s13  ;;  %s8297_s12 = int_to_ptr.vmem [resolvable:$true] %s5298_s12 }
  0xd4   : > { %s7372_s17 = scalar_lea.vmem %s8297_s12, 640  ;;  %s7376_s14 = sshll.u32 %s7458_s22, 4  ;;  %s7377_s14 = int_to_ptr.vmem [resolvable:$false] %s7376_s14 }
  0xd5   : > { %1690 = vmatpush1.bf16.msra.mxu1 %v6391_v42  ;;  %v6506_v42 = vld [vmem:[#allocation5 + $0x108] ss:$40 sps:$4 sm:$0xff]   ;;  %p7373_p6 = scmp.ne.s32.totalorder %s8297_s12, %s7372_s17  ;;  %s7378_s30 = scalar_lea.vmem %s7377_s14, 1280 }
  0xd6   : > { %1610 = vmatpush1.bf16.msra.mxu0 %v6364_v34  ;;  %1691 = vmatprep.subr.bf16.mxu1 %v6395_v43  ;;  %v6502_v34 = vld [vmem:[#allocation5 + $0xbc] ss:$40 sps:$4 sm:$0xff]   ;;  %p7379_p9 = scmp.lt.s32.totalorder %s8297_s12, %s7377_s14  ;;  %p7380_p0 = scmp.lt.s32.totalorder %s7378_s30, %s7372_s17 }
  0xd7   : > { %1611 = vmatprep.subr.bf16.mxu0 %v6368_v35  ;;  %v6458_v35 = vld [vmem:[#allocation5 + $0x150] ss:$40 sps:$4 sm:$0xff]   ;;  %v6514_v43 = vld [vmem:[#allocation5 + $0x15c] ss:$40 sps:$4 sm:$0xff]   ;;  %p7374_p3 = pnand %p7373_p6, %p8385_p10 }
  0xd8   : > { %p7381_p4 = por %p7380_p0, %p7379_p9 }
  0xd9   : > { %1692 = vmatpush1.bf16.msra.mxu1 %v6397_v46  ;;  %v6512_v46 = vld [vmem:[#allocation5 + $0x158] ss:$40 sps:$4 sm:$0xff]   ;;  %p7375_p13 = pneg %p7374_p3 }
  0xda   : > { %1612 = vmatpush1.bf16.msra.mxu0 %v6370_v40  ;;  %1693 = vmatprep.subr.bf16.mxu1 %v6401_v47  ;;  %v6461_v40 = vld [vmem:[#allocation5 + $0x1a0] ss:$40 sps:$4 sm:$0xff]   ;;  %v6520_v47 = vld [vmem:[#allocation5 + $0x1ac] ss:$40 sps:$4 sm:$0xff]  }
  0xdb   : > { %1613 = vmatprep.subr.bf16.mxu0 %v6374_v41  ;;  %v6466_v41 = vld [vmem:[#allocation5 + $0x1f4] ss:$40 sps:$4 sm:$0xff]   ;;  %p7382_p7 = pnand %p7381_p4, %p7375_p13 }
  0xdd   : > { %1694 = vmatpush1.bf16.msra.mxu1 %v6403_v49  ;;  %v6472_v49 = vld [vmem:[#allocation5 + $0x294] ss:$40 sps:$4 sm:$0xff]  }
  0xde   : > { %1614 = vmatpush1.bf16.msra.mxu0 %v6376_v44  ;;  %1695 = vmatprep.subr.bf16.mxu1 %v6409_v51  ;;  %v6464_v44 = vld [vmem:[#allocation5 + $0x1f0] ss:$40 sps:$4 sm:$0xff]   ;;  %v6526_v51 = vld [vmem:[#allocation5 + $0x1fc] ss:$40 sps:$4 sm:$0xff]  }
  0xdf   : > { %1615 = vmatprep.subr.bf16.mxu0 %v6380_v45  ;;  %v6469_v45 = vld [vmem:[#allocation5 + $0x244] ss:$40 sps:$4 sm:$0xff]  }
  0xe1   : > { %1696 = vmatpush1.bf16.msra.mxu1 %v6411_v53  ;;  %v6475_v53 = vld [vmem:[#allocation5 + $0x2e4] ss:$40 sps:$4 sm:$0xff]  }
  0xe2   : > { %1616 = vmatpush1.bf16.msra.mxu0 %v6382_v48  ;;  %1697 = vmatprep.subr.bf16.mxu1 %v6415_v55  ;;  %v6467_v48 = vld [vmem:[#allocation5 + $0x240] ss:$40 sps:$4 sm:$0xff]   ;;  %v6529_v55 = vld [vmem:[#allocation5 + $0x24c] ss:$40 sps:$4 sm:$0xff]  }
  0xe3   : > { %1617 = vmatprep.subr.bf16.mxu0 %v6386_v50  ;;  %v6518_v50 = vld [vmem:[#allocation5 + $0x1a8] ss:$40 sps:$4 sm:$0xff]  }
  0xe5   : > { %1698 = vmatpush1.bf16.msra.mxu1 %v6417_v57  ;;  %v6478_v57 = vld [vmem:[#allocation5 + $0x334] ss:$40 sps:$4 sm:$0xff]  }
  0xe6   : > { %1618 = vmatpush1.bf16.msra.mxu0 %v6388_v52  ;;  %1699 = vmatprep.subr.bf16.mxu1 %v6421_v59  ;;  %v6470_v52 = vld [vmem:[#allocation5 + $0x290] ss:$40 sps:$4 sm:$0xff]   ;;  %v6532_v59 = vld [vmem:[#allocation5 + $0x29c] ss:$40 sps:$4 sm:$0xff]  }
  0xe7   : > { %1619 = vmatprep.subr.bf16.mxu0 %v6392_v54  ;;  %v6524_v54 = vld [vmem:[#allocation5 + $0x1f8] ss:$40 sps:$4 sm:$0xff]  }
  0xe9   : > { %1700 = vmatpush1.bf16.msra.mxu1 %v6423_v61  ;;  %v6481_v61 = vld [vmem:[#allocation5 + $0x384] ss:$40 sps:$4 sm:$0xff]  }
  0xea   : > { %1620 = vmatpush1.bf16.msra.mxu0 %v6394_v56  ;;  %1701 = vmatprep.subr.bf16.mxu1 %v6427_v63  ;;  %v6473_v56 = vld [vmem:[#allocation5 + $0x2e0] ss:$40 sps:$4 sm:$0xff]   ;;  %v6535_v63 = vld [vmem:[#allocation5 + $0x2ec] ss:$40 sps:$4 sm:$0xff]  }
  0xeb   : > { %1621 = vmatprep.subr.bf16.mxu0 %v6398_v58  ;;  %v6527_v58 = vld [vmem:[#allocation5 + $0x248] ss:$40 sps:$4 sm:$0xff]  }
  0xed   : > { %1702 = vmatpush1.bf16.msra.mxu1 %v6429_v3  ;;  %v6533_v3 = vld [vmem:[#allocation5 + $0x2e8] ss:$40 sps:$4 sm:$0xff]  }
  0xee   : > { %1622 = vmatpush1.bf16.msra.mxu0 %v6400_v60  ;;  %1703 = vmatprep.subr.bf16.mxu1 %v6431_v4  ;;  %v6476_v60 = vld [vmem:[#allocation5 + $0x330] ss:$40 sps:$4 sm:$0xff]   ;;  %v6538_v4 = vld [vmem:[#allocation5 + $0x33c] ss:$40 sps:$4 sm:$0xff]  }
  0xef   : > { %1632 = vmatprep.subr.bf16.mxu0 %v6407_v62  ;;  %v6530_v62 = vld [vmem:[#allocation5 + $0x298] ss:$40 sps:$4 sm:$0xff]  }
  0xf1   : > { %1624 = vmatmul.mubr.bf16.vlgmr.msra.gmra.mrb[0].mxu0 %v7718_v0  ;;  %1704 = vmatpush1.bf16.msra.mxu1 %v6433_v8  ;;  %v6536_v8 = vld [vmem:[#allocation5 + $0x338] ss:$40 sps:$4 sm:$0xff]  }
  0xf2   : > { %1633 = vmatpush1.bf16.msra.mxu0 %v6405_v1  ;;  %1664 = vmatprep.mubr.bf16.mxu0 %v7457_v6  ;;  %v6479_v1 = vld [vmem:[#allocation5 + $0x380] ss:$40 sps:$4 sm:$0xff]  }
  0xf3   : > { %1634 = vmatprep.subr.bf16.mxu0 %v6414_v2  ;;  %1714 = vmatprep.subr.bf16.mxu1 %v6436_v9  ;;  %v6484_v2 = vld [vmem:[#allocation5 + $0x3d4] ss:$40 sps:$4 sm:$0xff]  }
  0xf4   : > { %1706 = vmatmul.mubr.bf16.vlgmr.msra.gmra.mrb[0].mxu1 %v7718_v0  ;;  %v6544_v9 = vld [vmem:[#allocation5 + $0x38c] ss:$40 sps:$4 sm:$0xff]  }
  0xf5   : > { %1715 = vmatpush1.bf16.msra.mxu1 %v6434_v12  ;;  %1746 = vmatprep.mubr.bf16.mxu1 %v7457_v6  ;;  %v6542_v12 = vld [vmem:[#allocation5 + $0x388] ss:$40 sps:$4 sm:$0xff]  }
  0xf6   : > { %1635 = vmatpush1.bf16.msra.mxu0 %v6412_v5  ;;  %1716 = vmatprep.subr.bf16.mxu1 %v6442_v13  ;;  %v6482_v5 = vld [vmem:[#allocation5 + $0x3d0] ss:$40 sps:$4 sm:$0xff]   ;;  %v6550_v13 = vld [vmem:[#allocation5 + $0x3dc] ss:$40 sps:$4 sm:$0xff]  }
  0xf7   : > { %1636 = vmatprep.subr.bf16.mxu0 %v6420_v7  ;;  %v6487_v7 = vld [vmem:[#allocation5 + $0x424] ss:$40 sps:$4 sm:$0xff]  }
  0xf9   : > { %1717 = vmatpush1.bf16.msra.mxu1 %v6440_v16  ;;  %v6548_v16 = vld [vmem:[#allocation5 + $0x3d8] ss:$40 sps:$4 sm:$0xff]  }
  0xfa   : > { %1637 = vmatpush1.bf16.msra.mxu0 %v6418_v10  ;;  %1718 = vmatprep.subr.bf16.mxu1 %v6448_v17  ;;  %v6485_v10 = vld [vmem:[#allocation5 + $0x420] ss:$40 sps:$4 sm:$0xff]   ;;  %v6556_v17 = vld [vmem:[#allocation5 + $0x42c] ss:$40 sps:$4 sm:$0xff]  }
  0xfb   : > { %1638 = vmatprep.subr.bf16.mxu0 %v6426_v11  ;;  %v6493_v11 = vld [vmem:[#allocation5 + $0x474] ss:$40 sps:$4 sm:$0xff]  }
  0xfd   : > { %1719 = vmatpush1.bf16.msra.mxu1 %v6446_v21  ;;  %v6554_v21 = vld [vmem:[#allocation5 + $0x428] ss:$40 sps:$4 sm:$0xff]  }
  0xfe   : > { %1639 = vmatpush1.bf16.msra.mxu0 %v6424_v14  ;;  %1720 = vmatprep.subr.bf16.mxu1 %v6454_v22  ;;  %v6491_v14 = vld [vmem:[#allocation5 + $0x470] ss:$40 sps:$4 sm:$0xff]   ;;  %v6562_v22 = vld [vmem:[#allocation5 + $0x47c] ss:$40 sps:$4 sm:$0xff]  }
  0xff   : > { %1755 = vmatprep.subr.bf16.mxu0 %v6439_v15  ;;  %v6499_v15 = vld [vmem:[#allocation5 + $0x4c4] ss:$40 sps:$4 sm:$0xff]  }
 0x101   : > { %5634 = vmatmul.mubr.msk.bf16.vlgmr.msra.gmra.mrb[0].mxu0 %vm1587_vm0, %v7724_v18  ;;  %1721 = vmatpush1.bf16.msra.mxu1 %v6452_v25  ;;  %v6560_v25 = vld [vmem:[#allocation5 + $0x478] ss:$40 sps:$4 sm:$0xff]  }
 0x102   : > { %1756 = vmatpush1.bf16.msra.mxu0 %v6437_v19  ;;  %1787 = vmatprep.mubr.bf16.mxu0 %v7714_v39  ;;  %v6497_v19 = vld [vmem:[#allocation5 + $0x4c0] ss:$40 sps:$4 sm:$0xff]  }
 0x103   : > { %1757 = vmatprep.subr.bf16.mxu0 %v6445_v20  ;;  %1837 = vmatprep.subr.bf16.mxu1 %v6490_v26  ;;  %v6505_v20 = vld [vmem:[#allocation5 + $0x514] ss:$40 sps:$4 sm:$0xff]  }
 0x104   : > { %5635 = vmatmul.mubr.msk.bf16.vlgmr.msra.gmra.mrb[0].mxu1 %vm1587_vm0, %v7724_v18  ;;  %v6568_v26 = vld [vmem:[#allocation5 + $0x4cc] ss:$40 sps:$4 sm:$0xff]  }
 0x105   : > { %1838 = vmatpush1.bf16.msra.mxu1 %v6488_v29  ;;  %1869 = vmatprep.mubr.bf16.mxu1 %v7714_v39  ;;  %v6566_v29 = vld [vmem:[#allocation5 + $0x4c8] ss:$40 sps:$4 sm:$0xff]  }
 0x106   : > { %1758 = vmatpush1.bf16.msra.mxu0 %v6443_v23  ;;  %1839 = vmatprep.subr.bf16.mxu1 %v6496_v30  ;;  %v6503_v23 = vld [vmem:[#allocation5 + $0x510] ss:$40 sps:$4 sm:$0xff]   ;;  %v6574_v30 = vld [vmem:[#allocation5 + $0x51c] ss:$40 sps:$4 sm:$0xff]  }
 0x107   : > { %1759 = vmatprep.subr.bf16.mxu0 %v6451_v24  ;;  %v6511_v24 = vld [vmem:[#allocation5 + $0x564] ss:$40 sps:$4 sm:$0xff]  }
 0x109   : > { %1840 = vmatpush1.bf16.msra.mxu1 %v6494_v33  ;;  %v6572_v33 = vld [vmem:[#allocation5 + $0x518] ss:$40 sps:$4 sm:$0xff]  }
 0x10a   : > { %1760 = vmatpush1.bf16.msra.mxu0 %v6449_v27  ;;  %1841 = vmatprep.subr.bf16.mxu1 %v6502_v34  ;;  %v6509_v27 = vld [vmem:[#allocation5 + $0x560] ss:$40 sps:$4 sm:$0xff]   ;;  %v6580_v34 = vld [vmem:[#allocation5 + $0x56c] ss:$40 sps:$4 sm:$0xff]  }
 0x10b   : > { %1761 = vmatprep.subr.bf16.mxu0 %v6457_v28  ;;  %v6517_v28 = vld [vmem:[#allocation5 + $0x5b4] ss:$40 sps:$4 sm:$0xff]  }
 0x10d   : > { %1842 = vmatpush1.bf16.msra.mxu1 %v6500_v37  ;;  %v6578_v37 = vld [vmem:[#allocation5 + $0x568] ss:$40 sps:$4 sm:$0xff]  }
 0x10e   : > { %1762 = vmatpush1.bf16.msra.mxu0 %v6455_v31  ;;  %1843 = vmatprep.subr.bf16.mxu1 %v6508_v38  ;;  %v6515_v31 = vld [vmem:[#allocation5 + $0x5b0] ss:$40 sps:$4 sm:$0xff]   ;;  %v6586_v38 = vld [vmem:[#allocation5 + $0x5bc] ss:$40 sps:$4 sm:$0xff]  }
 0x10f   : > { %1763 = vmatprep.subr.bf16.mxu0 %v6460_v32  ;;  %v6523_v32 = vld [vmem:[#allocation5 + $0x604] ss:$40 sps:$4 sm:$0xff]  }
 0x111   : > { %1844 = vmatpush1.bf16.msra.mxu1 %v6506_v42  ;;  %v6584_v42 = vld [vmem:[#allocation5 + $0x5b8] ss:$40 sps:$4 sm:$0xff]  }
 0x112   : > { %1764 = vmatpush1.bf16.msra.mxu0 %v6458_v35  ;;  %1845 = vmatprep.subr.bf16.mxu1 %v6514_v43  ;;  %v6521_v35 = vld [vmem:[#allocation5 + $0x600] ss:$40 sps:$4 sm:$0xff]   ;;  %v6592_v43 = vld [vmem:[#allocation5 + $0x60c] ss:$40 sps:$4 sm:$0xff]  }
 0x113   : > { %1765 = vmatprep.subr.bf16.mxu0 %v6463_v36  ;;  %v6541_v36 = vld [vmem:[#allocation5 + $0x24] ss:$40 sps:$4 sm:$0xff]  }
 0x115   : > { %1846 = vmatpush1.bf16.msra.mxu1 %v6512_v46  ;;  %v6590_v46 = vld [vmem:[#allocation5 + $0x608] ss:$40 sps:$4 sm:$0xff]  }
 0x116   : > { %1766 = vmatpush1.bf16.msra.mxu0 %v6461_v40  ;;  %1847 = vmatprep.subr.bf16.mxu1 %v6520_v47  ;;  %v6539_v40 = vld [vmem:[#allocation5 + $0x20] ss:$40 sps:$4 sm:$0xff]  }
 0x117   : > { %1767 = vmatprep.subr.bf16.mxu0 %v6466_v41  ;;  %v6547_v41 = vld [vmem:[#allocation5 + $0x74] ss:$40 sps:$4 sm:$0xff]   ;;  %v6551_v47 = vld [vmem:[#allocation5 + $0xc0] ss:$40 sps:$4 sm:$0xff]  }
 0x119   : > { %1848 = vmatpush1.bf16.msra.mxu1 %v6518_v50  ;;  %v6626_v50 = vld [vmem:[%s7708_s3] ss:$20 sps:$4 sm:$0xff]  }
 0x11a   : > { %1768 = vmatpush1.bf16.msra.mxu0 %v6464_v44  ;;  %1849 = vmatprep.subr.bf16.mxu1 %v6526_v51  ;;  %v6545_v44 = vld [vmem:[#allocation5 + $0x70] ss:$40 sps:$4 sm:$0xff]  }
 0x11b   : > { %1769 = vmatprep.subr.bf16.mxu0 %v6469_v45  ;;  %v6553_v45 = vld [vmem:[#allocation5 + $0xc4] ss:$40 sps:$4 sm:$0xff]   ;;  %v6557_v51 = vld [vmem:[#allocation5 + $0x110] ss:$40 sps:$4 sm:$0xff]  }
 0x11d   : > { %1850 = vmatpush1.bf16.msra.mxu1 %v6524_v54  ;;  %v6632_v54 = vld [vmem:[%s7708_s3 + $0x28] ss:$20 sps:$4 sm:$0xff]  }
 0x11e   : > { %1770 = vmatpush1.bf16.msra.mxu0 %v6467_v48  ;;  %1851 = vmatprep.subr.bf16.mxu1 %v6529_v55  ;;  %v6628_v48 = vld [vmem:[%s7708_s3 + $0x4] ss:$20 sps:$4 sm:$0xff]   ;;  %v6640_v55 = vld [vmem:[%s7708_s3 + $0x54] ss:$20 sps:$4 sm:$0xff]  }
 0x11f   : > { %1771 = vmatprep.subr.bf16.mxu0 %v6472_v49  ;;  %v6559_v49 = vld [vmem:[#allocation5 + $0x114] ss:$40 sps:$4 sm:$0xff]  }
 0x121   : > { %1852 = vmatpush1.bf16.msra.mxu1 %v6527_v58  ;;  %v6569_v58 = vld [vmem:[#allocation5 + $0x1b0] ss:$40 sps:$4 sm:$0xff]  }
 0x122   : > { %1772 = vmatpush1.bf16.msra.mxu0 %v6470_v52  ;;  %1853 = vmatprep.subr.bf16.mxu1 %v6532_v59  ;;  %v6634_v52 = vld [vmem:[%s7708_s3 + $0x2c] ss:$20 sps:$4 sm:$0xff]   ;;  %v6646_v59 = vld [vmem:[%s7708_s3 + $0x7c] ss:$20 sps:$4 sm:$0xff]  }
 0x123   : > { %1773 = vmatprep.subr.bf16.mxu0 %v6475_v53  ;;  %v6565_v53 = vld [vmem:[#allocation5 + $0x164] ss:$40 sps:$4 sm:$0xff]  }
 0x125   : > { %1854 = vmatpush1.bf16.msra.mxu1 %v6530_v62  ;;  %v6652_v62 = vld [vmem:[%s7708_s3 + $0xa4] ss:$20 sps:$4 sm:$0xff]  }
 0x126   : > { %1774 = vmatpush1.bf16.msra.mxu0 %v6473_v56  ;;  %1855 = vmatprep.subr.bf16.mxu1 %v6535_v63  ;;  %v6571_v56 = vld [vmem:[#allocation5 + $0x1b4] ss:$40 sps:$4 sm:$0xff]  }
 0x127   : > { %1775 = vmatprep.subr.bf16.mxu0 %v6478_v57  ;;  %v6638_v57 = vld [vmem:[%s7708_s3 + $0x50] ss:$20 sps:$4 sm:$0xff]  }
 0x128   : > { %v6583_v63 = vld [vmem:[#allocation5 + $0x254] ss:$40 sps:$4 sm:$0xff]  }
 0x129   : > { %1856 = vmatpush1.bf16.msra.mxu1 %v6533_v3  ;;  %v6658_v3 = vld [vmem:[%s7708_s3 + $0xcc] ss:$20 sps:$4 sm:$0xff]  }
 0x12a   : > { %1776 = vmatpush1.bf16.msra.mxu0 %v6476_v60  ;;  %1857 = vmatprep.subr.bf16.mxu1 %v6538_v4  ;;  %v6577_v60 = vld [vmem:[#allocation5 + $0x204] ss:$40 sps:$4 sm:$0xff]  }
 0x12b   : > { %1777 = vmatprep.subr.bf16.mxu0 %v6481_v61  ;;  %v6644_v61 = vld [vmem:[%s7708_s3 + $0x78] ss:$20 sps:$4 sm:$0xff]  }
 0x12c   : > { %v6589_v4 = vld [vmem:[#allocation5 + $0x2a4] ss:$40 sps:$4 sm:$0xff]  }
 0x12d   : > { %1858 = vmatpush1.bf16.msra.mxu1 %v6536_v8  ;;  %v6664_v8 = vld [vmem:[%s7708_s3 + $0xf4] ss:$20 sps:$4 sm:$0xff]  }
 0x12e   : > { %1778 = vmatpush1.bf16.msra.mxu0 %v6479_v1  ;;  %1859 = vmatprep.subr.bf16.mxu1 %v6544_v9  ;;  %v6650_v1 = vld [vmem:[%s7708_s3 + $0xa0] ss:$20 sps:$4 sm:$0xff]  }
 0x12f   : > { %1779 = vmatprep.subr.bf16.mxu0 %v6484_v2  ;;  %v6581_v2 = vld [vmem:[#allocation5 + $0x250] ss:$40 sps:$4 sm:$0xff]   ;;  %v6595_v9 = vld [vmem:[#allocation5 + $0x2f4] ss:$40 sps:$4 sm:$0xff]  }
 0x131   : > { %1860 = vmatpush1.bf16.msra.mxu1 %v6542_v12  ;;  %v6670_v12 = vld [vmem:[%s7708_s3 + $0x11c] ss:$20 sps:$4 sm:$0xff]  }
 0x132   : > { %1780 = vmatpush1.bf16.msra.mxu0 %v6482_v5  ;;  %1861 = vmatprep.subr.bf16.mxu1 %v6550_v13  ;;  %v6656_v5 = vld [vmem:[%s7708_s3 + $0xc8] ss:$20 sps:$4 sm:$0xff]  }
 0x133   : > { %1781 = vmatprep.subr.bf16.mxu0 %v6487_v7  ;;  %v6587_v7 = vld [vmem:[#allocation5 + $0x2a0] ss:$40 sps:$4 sm:$0xff]   ;;  %v6598_v13 = vld [vmem:[#allocation5 + $0x344] ss:$40 sps:$4 sm:$0xff]  }
 0x135   : > { %1862 = vmatpush1.bf16.msra.mxu1 %v6548_v16  ;;  %v6676_v16 = vld [vmem:[%s7708_s3 + $0x144] ss:$20 sps:$4 sm:$0xff]  }
 0x136   : > { %1782 = vmatpush1.bf16.msra.mxu0 %v6485_v10  ;;  %1863 = vmatprep.subr.bf16.mxu1 %v6556_v17  ;;  %v6662_v10 = vld [vmem:[%s7708_s3 + $0xf0] ss:$20 sps:$4 sm:$0xff]  }
 0x137   : > { %1783 = vmatprep.subr.bf16.mxu0 %v6493_v11  ;;  %v6593_v11 = vld [vmem:[#allocation5 + $0x2f0] ss:$40 sps:$4 sm:$0xff]   ;;  %v6601_v17 = vld [vmem:[#allocation5 + $0x394] ss:$40 sps:$4 sm:$0xff]  }
 0x139   : > { %1864 = vmatpush1.bf16.msra.mxu1 %v6554_v21  ;;  %v6599_v21 = vld [vmem:[#allocation5 + $0x390] ss:$40 sps:$4 sm:$0xff]  }
 0x13a   : > { %1784 = vmatpush1.bf16.msra.mxu0 %v6491_v14  ;;  %1865 = vmatprep.subr.bf16.mxu1 %v6562_v22  ;;  %v6668_v14 = vld [vmem:[%s7708_s3 + $0x118] ss:$20 sps:$4 sm:$0xff]  }
 0x13b   : > { %1785 = vmatprep.subr.bf16.mxu0 %v6499_v15  ;;  %v6596_v15 = vld [vmem:[#allocation5 + $0x340] ss:$40 sps:$4 sm:$0xff]   ;;  %v6604_v22 = vld [vmem:[#allocation5 + $0x3e4] ss:$40 sps:$4 sm:$0xff]  }
 0x13d   : > { %1866 = vmatpush1.bf16.msra.mxu1 %v6560_v25  ;;  %v6602_v25 = vld [vmem:[#allocation5 + $0x3e0] ss:$40 sps:$4 sm:$0xff]  }
 0x13e   : > { %1786 = vmatpush1.bf16.msra.mxu0 %v6497_v19  ;;  %1867 = vmatprep.subr.bf16.mxu1 %v6568_v26  ;;  %v6674_v19 = vld [vmem:[%s7708_s3 + $0x140] ss:$20 sps:$4 sm:$0xff]  }
 0x13f   : > { %1796 = vmatprep.subr.bf16.mxu0 %v6505_v20  ;;  %v6682_v20 = vld [vmem:[%s7708_s3 + $0x16c] ss:$20 sps:$4 sm:$0xff]  }
 0x140   : > { %v6607_v26 = vld [vmem:[#allocation5 + $0x434] ss:$40 sps:$4 sm:$0xff]  }
 0x141   : > { %1788 = vmatmul.mubr.bf16.vlgmr.msra.gmra.mrb[4].mxu0 %v7718_v0  ;;  %1868 = vmatpush1.bf16.msra.mxu1 %v6566_v29  ;;  %v6694_v29 = vld [vmem:[%s7708_s3 + $0x1bc] ss:$20 sps:$4 sm:$0xff]  }
 0x142   : > { %1797 = vmatpush1.bf16.msra.mxu0 %v6503_v23  ;;  %1828 = vmatprep.mubr.bf16.mxu0 %v7457_v6  ;;  %v6680_v23 = vld [vmem:[%s7708_s3 + $0x168] ss:$20 sps:$4 sm:$0xff]  }
 0x143   : > { %1798 = vmatprep.subr.bf16.mxu0 %v6511_v24  ;;  %1878 = vmatprep.subr.bf16.mxu1 %v6574_v30  ;;  %v6688_v24 = vld [vmem:[%s7708_s3 + $0x194] ss:$20 sps:$4 sm:$0xff]   ;;  %v6610_v30 = vld [vmem:[#allocation5 + $0x484] ss:$40 sps:$4 sm:$0xff]  }
 0x144   : > { %1870 = vmatmul.mubr.bf16.vlgmr.msra.gmra.mrb[4].mxu1 %v7718_v0 }
 0x145   : > { %1879 = vmatpush1.bf16.msra.mxu1 %v6572_v33  ;;  %1910 = vmatprep.mubr.bf16.mxu1 %v7457_v6  ;;  %v6700_v33 = vld [vmem:[%s7708_s3 + $0x1e4] ss:$20 sps:$4 sm:$0xff]  }
 0x146   : > { %1799 = vmatpush1.bf16.msra.mxu0 %v6509_v27  ;;  %1880 = vmatprep.subr.bf16.mxu1 %v6580_v34  ;;  %v6686_v27 = vld [vmem:[%s7708_s3 + $0x190] ss:$20 sps:$4 sm:$0xff]  }
 0x147   : > { %1800 = vmatprep.subr.bf16.mxu0 %v6517_v28  ;;  %v6605_v28 = vld [vmem:[#allocation5 + $0x430] ss:$40 sps:$4 sm:$0xff]   ;;  %v6613_v34 = vld [vmem:[#allocation5 + $0x4d4] ss:$40 sps:$4 sm:$0xff]  }
 0x149   : > { %1881 = vmatpush1.bf16.msra.mxu1 %v6578_v37  ;;  %v6706_v37 = vld [vmem:[%s7708_s3 + $0x20c] ss:$20 sps:$4 sm:$0xff]  }
 0x14a   : > { %1801 = vmatpush1.bf16.msra.mxu0 %v6515_v31  ;;  %1882 = vmatprep.subr.bf16.mxu1 %v6586_v38  ;;  %v6692_v31 = vld [vmem:[%s7708_s3 + $0x1b8] ss:$20 sps:$4 sm:$0xff]  }
 0x14b   : > { %1802 = vmatprep.subr.bf16.mxu0 %v6523_v32  ;;  %v6608_v32 = vld [vmem:[#allocation5 + $0x480] ss:$40 sps:$4 sm:$0xff]   ;;  %v6616_v38 = vld [vmem:[#allocation5 + $0x524] ss:$40 sps:$4 sm:$0xff]  }
 0x14d   : > { %1883 = vmatpush1.bf16.msra.mxu1 %v6584_v42  ;;  %v6712_v42 = vld [vmem:[%s7708_s3 + $0x234] ss:$20 sps:$4 sm:$0xff]  }
 0x14e   : > { %1803 = vmatpush1.bf16.msra.mxu0 %v6521_v35  ;;  %1884 = vmatprep.subr.bf16.mxu1 %v6592_v43  ;;  %v6698_v35 = vld [vmem:[%s7708_s3 + $0x1e0] ss:$20 sps:$4 sm:$0xff]  }
 0x14f   : > { %1919 = vmatprep.subr.bf16.mxu0 %v6541_v36  ;;  %v6611_v36 = vld [vmem:[#allocation5 + $0x4d0] ss:$40 sps:$4 sm:$0xff]   ;;  %v6619_v43 = vld [vmem:[#allocation5 + $0x574] ss:$40 sps:$4 sm:$0xff]  }
 0x151   : > { %5636 = vmatmul.mubr.msk.bf16.vlgmr.msra.gmra.mrb[4].mxu0 %vm1587_vm0, %v7724_v18  ;;  %1885 = vmatpush1.bf16.msra.mxu1 %v6590_v46  ;;  %v6718_v46 = vld [vmem:[%s7708_s3 + $0x25c] ss:$20 sps:$4 sm:$0xff]  }
 0x152   : > { %1920 = vmatpush1.bf16.msra.mxu0 %v6539_v40  ;;  %1951 = vmatprep.mubr.bf16.mxu0 %v7714_v39  ;;  %v6563_v39 = vld [vmem:[#allocation5 + $0x160] ss:$40 sps:$4 sm:$0xff]  }
 0x153   : > { %1921 = vmatprep.subr.bf16.mxu0 %v6547_v41  ;;  %4668 = vmatprep.subr.bf16.mxu1 %v6628_v48  ;;  %v6704_v40 = vld [vmem:[%s7708_s3 + $0x208] ss:$20 sps:$4 sm:$0xff]   ;;  %v6716_v48 = vld [vmem:[%s7708_s3 + $0x258] ss:$20 sps:$4 sm:$0xff]  }
 0x154   : > { %5637 = vmatmul.mubr.msk.bf16.vlgmr.msra.gmra.mrb[4].mxu1 %vm1587_vm0, %v7724_v18  ;;  %v6575_v18 = vld [vmem:[#allocation5 + $0x200] ss:$40 sps:$4 sm:$0xff]  }
 0x155   : > { %4669 = vmatpush1.bf16.msra.mxu1 %v6626_v50  ;;  %v6614_v41 = vld [vmem:[#allocation5 + $0x520] ss:$40 sps:$4 sm:$0xff]  }
 0x156   : > { %1922 = vmatpush1.bf16.msra.mxu0 %v6545_v44  ;;  %4670 = vmatprep.subr.bf16.mxu1 %v6634_v52  ;;  %v6710_v44 = vld [vmem:[%s7708_s3 + $0x230] ss:$20 sps:$4 sm:$0xff]   ;;  %v6620_v50 = vld [vmem:[#allocation5 + $0x5c0] ss:$40 sps:$4 sm:$0xff]  }
 0x157   : > { %1923 = vmatprep.subr.bf16.mxu0 %v6553_v45  ;;  %v6617_v45 = vld [vmem:[#allocation5 + $0x570] ss:$40 sps:$4 sm:$0xff]  }
 0x158   : > { %v6631_v52 = vld [vmem:[%s7708_s3 + $0xc] ss:$20 sps:$4 sm:$0xff]  }
 0x159   : > { %4671 = vmatpush1.bf16.msra.mxu1 %v6632_v54  ;;  %v7226_v54 = vld [vmem:[#allocation2 + $0x8] ss:$0 sps:$4 sm:$0xff]  }
 0x15a   : > { %1924 = vmatpush1.bf16.msra.mxu0 %v6551_v47  ;;  %4672 = vmatprep.subr.bf16.mxu1 %v6640_v55  ;;  %v6622_v47 = vld [vmem:[#allocation5 + $0x5c4] ss:$40 sps:$4 sm:$0xff]  }
 0x15b   : > { %1925 = vmatprep.subr.bf16.mxu0 %v6559_v49  ;;  %v6724_v49 = vld [vmem:[%s7708_s3 + $0x284] ss:$20 sps:$4 sm:$0xff]   ;;  %v6643_v55 = vld [vmem:[%s7708_s3 + $0x5c] ss:$20 sps:$4 sm:$0xff]  }
 0x15d   : > { %4673 = vmatpush1.bf16.msra.mxu1 %v6638_v57  ;;  %v6649_v57 = vld [vmem:[%s7708_s3 + $0x84] ss:$20 sps:$4 sm:$0xff]  }
 0x15e   : > { %1926 = vmatpush1.bf16.msra.mxu0 %v6557_v51  ;;  %4674 = vmatprep.subr.bf16.mxu1 %v6646_v59  ;;  %v6625_v51 = vld [vmem:[#allocation5 + $0x614] ss:$40 sps:$4 sm:$0xff]  }
 0x15f   : > { %1927 = vmatprep.subr.bf16.mxu0 %v6565_v53  ;;  %v6637_v53 = vld [vmem:[%s7708_s3 + $0x34] ss:$20 sps:$4 sm:$0xff]   ;;  %v6655_v59 = vld [vmem:[%s7708_s3 + $0xac] ss:$20 sps:$4 sm:$0xff]  }
 0x161   : > { %4675 = vmatpush1.bf16.msra.mxu1 %v6644_v61  ;;  %v6661_v61 = vld [vmem:[%s7708_s3 + $0xd4] ss:$20 sps:$4 sm:$0xff]  }
 0x162   : > { %1928 = vmatpush1.bf16.msra.mxu0 %v6563_v39  ;;  %4676 = vmatprep.subr.bf16.mxu1 %v6652_v62  ;;  %v6635_v39 = vld [vmem:[%s7708_s3 + $0x30] ss:$20 sps:$4 sm:$0xff]  }
 0x163   : > { %1929 = vmatprep.subr.bf16.mxu0 %v6571_v56  ;;  %v6641_v56 = vld [vmem:[%s7708_s3 + $0x58] ss:$20 sps:$4 sm:$0xff]   ;;  %v6667_v62 = vld [vmem:[%s7708_s3 + $0xfc] ss:$20 sps:$4 sm:$0xff]  }
 0x165   : > { %4677 = vmatpush1.bf16.msra.mxu1 %v6650_v1  ;;  %v6673_v1 = vld [vmem:[%s7708_s3 + $0x124] ss:$20 sps:$4 sm:$0xff]  }
 0x166   : > { %1930 = vmatpush1.bf16.msra.mxu0 %v6569_v58  ;;  %4678 = vmatprep.subr.bf16.mxu1 %v6658_v3  ;;  %v6647_v58 = vld [vmem:[%s7708_s3 + $0x80] ss:$20 sps:$4 sm:$0xff]  }
 0x167   : > { %1931 = vmatprep.subr.bf16.mxu0 %v6577_v60  ;;  %v6653_v60 = vld [vmem:[%s7708_s3 + $0xa8] ss:$20 sps:$4 sm:$0xff]   ;;  %v6679_v3 = vld [vmem:[%s7708_s3 + $0x14c] ss:$20 sps:$4 sm:$0xff]  }
 0x169   : > { %4679 = vmatpush1.bf16.msra.mxu1 %v6656_v5  ;;  %v6685_v5 = vld [vmem:[%s7708_s3 + $0x174] ss:$20 sps:$4 sm:$0xff]  }
 0x16a   : > { %1932 = vmatpush1.bf16.msra.mxu0 %v6575_v18  ;;  %4680 = vmatprep.subr.bf16.mxu1 %v6664_v8  ;;  %v6659_v18 = vld [vmem:[%s7708_s3 + $0xd0] ss:$20 sps:$4 sm:$0xff]  }
 0x16b   : > { %1933 = vmatprep.subr.bf16.mxu0 %v6583_v63  ;;  %v6665_v63 = vld [vmem:[%s7708_s3 + $0xf8] ss:$20 sps:$4 sm:$0xff]   ;;  %v6691_v8 = vld [vmem:[%s7708_s3 + $0x19c] ss:$20 sps:$4 sm:$0xff]  }
 0x16d   : > { %4681 = vmatpush1.bf16.msra.mxu1 %v6662_v10  ;;  %v6689_v10 = vld [vmem:[%s7708_s3 + $0x198] ss:$20 sps:$4 sm:$0xff]  }
 0x16e   : > { %1934 = vmatpush1.bf16.msra.mxu0 %v6581_v2  ;;  %4682 = vmatprep.subr.bf16.mxu1 %v6670_v12  ;;  %v6671_v2 = vld [vmem:[%s7708_s3 + $0x120] ss:$20 sps:$4 sm:$0xff]  }
 0x16f   : > { %1935 = vmatprep.subr.bf16.mxu0 %v6589_v4  ;;  %v6677_v4 = vld [vmem:[%s7708_s3 + $0x148] ss:$20 sps:$4 sm:$0xff]  }
 0x171   : > { %4683 = vmatpush1.bf16.msra.mxu1 %v6668_v14  ;;  %v6703_v14 = vld [vmem:[%s7708_s3 + $0x1ec] ss:$20 sps:$4 sm:$0xff]  }
 0x172   : > { %1936 = vmatpush1.bf16.msra.mxu0 %v6587_v7  ;;  %4684 = vmatprep.subr.bf16.mxu1 %v6676_v16  ;;  %v6683_v7 = vld [vmem:[%s7708_s3 + $0x170] ss:$20 sps:$4 sm:$0xff]  }
 0x173   : > { %1937 = vmatprep.subr.bf16.mxu0 %v6595_v9  ;;  %v527_v9 = vlaneseq }
 0x175   : > { %4685 = vmatpush1.bf16.msra.mxu1 %v6674_v19  ;;  %v7800_v12 = vshrl.u32 %v527_v9, 7  ;;  %v6709_v19 = vld [vmem:[%s7708_s3 + $0x214] ss:$20 sps:$4 sm:$0xff]  }
 0x176   : > { %1938 = vmatpush1.bf16.msra.mxu0 %v6593_v11  ;;  %4686 = vmatprep.subr.bf16.mxu1 %v6682_v20  ;;  %v6697_v11 = vld [vmem:[%s7708_s3 + $0x1c4] ss:$20 sps:$4 sm:$0xff]   ;;  %v6743_v9 = vld [vmem:[%s7708_s3 + $0x300] ss:$20 sps:$4 sm:$0xff]  }
 0x177   : > { %1939 = vmatprep.subr.bf16.mxu0 %v6598_v13  ;;  %v6695_v13 = vld [vmem:[%s7708_s3 + $0x1c0] ss:$20 sps:$4 sm:$0xff]   ;;  %v7807_v16 = vsub.s32 0, %v7800_v12  ;;  %v7812_v20 = vsub.s32 1, %v7800_v12 }
 0x179   : > { %4687 = vmatpush1.bf16.msra.mxu1 %v6680_v23  ;;  %v6715_v23 = vld [vmem:[%s7708_s3 + $0x23c] ss:$20 sps:$4 sm:$0xff]  }
 0x17a   : > { %1940 = vmatpush1.bf16.msra.mxu0 %v6596_v15  ;;  %4688 = vmatprep.subr.bf16.mxu1 %v6688_v24  ;;  %v7804_v15 = vld [vmem:[#allocation7] sm:$0xff] }
 0x17b   : > { %1941 = vmatprep.subr.bf16.mxu0 %v6601_v17  ;;  %v6701_v17 = vld [vmem:[%s7708_s3 + $0x1e8] ss:$20 sps:$4 sm:$0xff]   ;;  %v534_v24 = vrot.slane %v7804_v15, %v7812_v20 }
 0x17d   : > { %4689 = vmatpush1.bf16.msra.mxu1 %v6686_v27 }
 0x17e   : > { %1942 = vmatpush1.bf16.msra.mxu0 %v6599_v21  ;;  %4690 = vmatprep.subr.bf16.mxu1 %v6694_v29  ;;  %v530_v21 = vrot.slane %v7804_v15, %v7807_v16  ;;  %v6721_v29 = vld [vmem:[%s7708_s3 + $0x264] ss:$20 sps:$4 sm:$0xff]  }
 0x17f   : > { %1943 = vmatprep.subr.bf16.mxu0 %v6604_v22  ;;  %v6707_v22 = vld [vmem:[%s7708_s3 + $0x210] ss:$20 sps:$4 sm:$0xff]  }
 0x181   : > { %4691 = vmatpush1.bf16.msra.mxu1 %v6692_v31 }
 0x182   : > { %1944 = vmatpush1.bf16.msra.mxu0 %v6602_v25  ;;  %4692 = vmatprep.subr.bf16.mxu1 %v6700_v33 }
 0x183   : > { %1945 = vmatprep.subr.bf16.mxu0 %v6607_v26 }
 0x185   : > { %4693 = vmatpush1.bf16.msra.mxu1 %v6698_v35 }
 0x186   : > { %1946 = vmatpush1.bf16.msra.mxu0 %v6605_v28  ;;  %4694 = vmatprep.subr.bf16.mxu1 %v6706_v37  ;;  %v6713_v28 = vld [vmem:[%s7708_s3 + $0x238] ss:$20 sps:$4 sm:$0xff]  }
 0x187   : > { %1947 = vmatprep.subr.bf16.mxu0 %v6610_v30  ;;  %v6727_v37 = vld [vmem:[%s7708_s3 + $0x28c] ss:$20 sps:$4 sm:$0xff]  }
 0x189   : > { %4695 = vmatpush1.bf16.msra.mxu1 %v6704_v40 }
 0x18a   : > { %1948 = vmatpush1.bf16.msra.mxu0 %v6608_v32  ;;  %4696 = vmatprep.subr.bf16.mxu1 %v6712_v42  ;;  %v541_v32 = vsub.s32 3, %v7800_v12 }
 0x18b   : > { %1949 = vmatprep.subr.bf16.mxu0 %v6613_v34 }
 0x18d   : > { %4697 = vmatpush1.bf16.msra.mxu1 %v6710_v44 }
 0x18e   : > { %1950 = vmatpush1.bf16.msra.mxu0 %v6611_v36  ;;  %4698 = vmatprep.subr.bf16.mxu1 %v6718_v46  ;;  %v6719_v36 = vld [vmem:[%s7708_s3 + $0x260] ss:$20 sps:$4 sm:$0xff]  }
 0x18f   : > { %1960 = vmatprep.subr.bf16.mxu0 %v6616_v38  ;;  %v542_v38 = vrot.slane %v7804_v15, %v541_v32 }
 0x191   : > { %1952 = vmatmul.mubr.bf16.vlgmr.msra.gmra.mrb[8].mxu0 %v7718_v0  ;;  %4699 = vmatpush1.bf16.msra.mxu1 %v6716_v48  ;;  %v6623_v0 = vld [vmem:[#allocation5 + $0x610] ss:$40 sps:$4 sm:$0xff]  }
 0x192   : > { %1961 = vmatpush1.bf16.msra.mxu0 %v6614_v41  ;;  %1992 = vmatprep.mubr.bf16.mxu0 %v7457_v6  ;;  %v6629_v6 = vld [vmem:[%s7708_s3 + $0x8] ss:$20 sps:$4 sm:$0xff]  }
 0x193   : > { %1962 = vmatprep.subr.bf16.mxu0 %v6619_v43  ;;  %4709 = vmatprep.subr.bf16.mxu1 %v6724_v49 }
 0x196   : > { %1963 = vmatpush1.bf16.msra.mxu0 %v6617_v45 }
 0x197   : > { %1964 = vmatprep.subr.bf16.mxu0 %v6622_v47 }
 0x19a   : > { %1965 = vmatpush1.bf16.msra.mxu0 %v6620_v50 }
 0x19b   : > { %1966 = vmatprep.subr.bf16.mxu0 %v6625_v51 }
 0x19e   : > { %1967 = vmatpush1.bf16.msra.mxu0 %v6623_v0 }
 0x19f   : > { %4873 = vmatprep.subr.bf16.mxu0 %v6631_v52 }
 0x1a1   : > { %5638 = vmatmul.mubr.msk.bf16.vlgmr.msra.gmra.mrb[8].mxu0 %vm1587_vm0, %v7226_v54  ;;  %v6722_v54 = vld [vmem:[%s7708_s3 + $0x280] ss:$20 sps:$4 sm:$0xff]  }
 0x1a2   : > { %4874 = vmatpush1.bf16.msra.mxu0 %v6629_v6 }
 0x1a3   : > { %4875 = vmatprep.subr.bf16.mxu0 %v6637_v53 }
 0x1a6   : > { %4876 = vmatpush1.bf16.msra.mxu0 %v6635_v39  ;;  %v6725_v39 = vld [vmem:[%s7708_s3 + $0x288] ss:$20 sps:$4 sm:$0xff]  }
 0x1a7   : > { %4877 = vmatprep.subr.bf16.mxu0 %v6643_v55 }
 0x1aa   : > { %4878 = vmatpush1.bf16.msra.mxu0 %v6641_v56 }
 0x1ab   : > { %4879 = vmatprep.subr.bf16.mxu0 %v6649_v57  ;;  %v6730_v57 = vld [vmem:[%s7708_s3 + $0x2ac] ss:$20 sps:$4 sm:$0xff]  }
 0x1ae   : > { %4880 = vmatpush1.bf16.msra.mxu0 %v6647_v58  ;;  %v6733_v58 = vld [vmem:[%s7708_s3 + $0x2b4] ss:$20 sps:$4 sm:$0xff]  }
 0x1af   : > { %4881 = vmatprep.subr.bf16.mxu0 %v6655_v59  ;;  %v537_v59 = vsub.s32 2, %v7800_v12 }
 0x1b2   : > { %4882 = vmatpush1.bf16.msra.mxu0 %v6653_v60  ;;  %v6728_v60 = vld [vmem:[%s7708_s3 + $0x2a8] ss:$20 sps:$4 sm:$0xff]  }
 0x1b3   : > { %4883 = vmatprep.subr.bf16.mxu0 %v6661_v61  ;;  %v6731_v61 = vld [vmem:[%s7708_s3 + $0x2b0] ss:$20 sps:$4 sm:$0xff]  }
 0x1b6   : > { %4884 = vmatpush1.bf16.msra.mxu0 %v6659_v18  ;;  %v6736_v18 = vld [vmem:[%s7708_s3 + $0x2d4] ss:$20 sps:$4 sm:$0xff]  }
 0x1b7   : > { %4885 = vmatprep.subr.bf16.mxu0 %v6667_v62  ;;  %v6739_v62 = vld [vmem:[%s7708_s3 + $0x2dc] ss:$20 sps:$4 sm:$0xff]  }
 0x1ba   : > { %4886 = vmatpush1.bf16.msra.mxu0 %v6665_v63 }
 0x1bb   : > { %4887 = vmatprep.subr.bf16.mxu0 %v6673_v1 }
 0x1be   : > { %4888 = vmatpush1.bf16.msra.mxu0 %v6671_v2  ;;  %v6734_v2 = vld [vmem:[%s7708_s3 + $0x2d0] ss:$20 sps:$4 sm:$0xff]  }
 0x1bf   : > { %4889 = vmatprep.subr.bf16.mxu0 %v6679_v3  ;;  %v6737_v3 = vld [vmem:[%s7708_s3 + $0x2d8] ss:$20 sps:$4 sm:$0xff]  }
 0x1c2   : > { %4890 = vmatpush1.bf16.msra.mxu0 %v6677_v4 }
 0x1c3   : > { %4891 = vmatprep.subr.bf16.mxu0 %v6685_v5  ;;  %v6742_v5 = vld [vmem:[%s7708_s3 + $0x2fc] ss:$20 sps:$4 sm:$0xff]  }
 0x1c6   : > { %4892 = vmatpush1.bf16.msra.mxu0 %v6683_v7  ;;  %v6745_v7 = vld [vmem:[%s7708_s3 + $0x304] ss:$20 sps:$4 sm:$0xff]  }
 0x1c7   : > { %4893 = vmatprep.subr.bf16.mxu0 %v6691_v8  ;;  %v6740_v8 = vld [vmem:[%s7708_s3 + $0x2f8] ss:$20 sps:$4 sm:$0xff]  }
 0x1ca   : > { %4894 = vmatpush1.bf16.msra.mxu0 %v6689_v10  ;;  %v6748_v10 = vld [vmem:[%s7708_s3 + $0x324] ss:$20 sps:$4 sm:$0xff]  }
 0x1cb   : > { %4895 = vmatprep.subr.bf16.mxu0 %v6697_v11  ;;  %v6751_v11 = vld [vmem:[%s7708_s3 + $0x32c] ss:$20 sps:$4 sm:$0xff]  }
 0x1ce   : > { %4896 = vmatpush1.bf16.msra.mxu0 %v6695_v13  ;;  %v6746_v13 = vld [vmem:[%s7708_s3 + $0x320] ss:$20 sps:$4 sm:$0xff]  }
 0x1cf   : > { %4897 = vmatprep.subr.bf16.mxu0 %v6703_v14  ;;  %v6749_v14 = vld [vmem:[%s7708_s3 + $0x328] ss:$20 sps:$4 sm:$0xff]  }
 0x1d2   : > { %4898 = vmatpush1.bf16.msra.mxu0 %v6701_v17  ;;  %v538_v17 = vrot.slane %v7804_v15, %v537_v59 }
 0x1d3   : > { %4899 = vmatprep.subr.bf16.mxu0 %v6709_v19  ;;  %v6754_v19 = vld [vmem:[%s7708_s3 + $0x34c] ss:$20 sps:$4 sm:$0xff]  }
 0x1d4   : > { %v1666_v25 = vpop.f32.mrb[0].mxu0 }
 0x1d5   : > { %v6164_v26 = vadd.f32 %v1666_v25, %v530_v21  ;;  %v1668_v27 = vpop.f32.mrb[1].mxu0  ;;  %v6757_v21 = vld [vmem:[%s7708_s3 + $0x354] ss:$20 sps:$4 sm:$0xff]  }
 0x1d6   : > { %v6165_v30 = vadd.f32 %v1668_v27, %v534_v24  ;;  %v1670_v31 = vpop.f32.mrb[2].mxu0  ;;  %4900 = vmatpush1.bf16.msra.mxu0 %v6707_v22  ;;  %v6752_v22 = vld [vmem:[%s7708_s3 + $0x348] ss:$20 sps:$4 sm:$0xff]   ;;  %v6758_v27 = vld [vmem:[%s7708_s3 + $0x370] ss:$20 sps:$4 sm:$0xff]  }
 0x1d7   : > { %v5639_v33 = vmul.f32 -1.442695, %v6164_v26  ;;  %v1671_v34 = vpop.f32.mrb[3].mxu0  ;;  %4901 = vmatprep.subr.bf16.mxu0 %v6715_v23  ;;  %v7828_v40 = vpop.f32.mrb[0].mxu1  ;;  %v6755_v23 = vld [vmem:[%s7708_s3 + $0x350] ss:$20 sps:$4 sm:$0xff]  }
 0x1d8   : > { %v5640_v35 = vmul.f32 -1.442695, %v6165_v30  ;;  %v1750_v41 = vpop.f32.mrb[1].mxu1  ;;  %v7869_v24 = vadd.f32 %v7828_v40, %v538_v17  ;;  %v6760_v25 = vld [vmem:[%s7708_s3 + $0x374] ss:$20 sps:$4 sm:$0xff]  }
 0x1d9   : > { %7186 = vpow2.f32 %v5639_v33  ;;  %v6167_v42 = vadd.f32 %v1750_v41, %v542_v38  ;;  %v1752_v43 = vpop.f32.mrb[2].mxu1  ;;  %v6769_v31 = vld [vmem:[%s7708_s3 + $0x3a4] ss:$20 sps:$4 sm:$0xff]   ;;  %v6767_v34 = vld [vmem:[%s7708_s3 + $0x3a0] ss:$20 sps:$4 sm:$0xff]  }
 0x1da   : > { %7188 = vpow2.f32 %v5640_v35  ;;  %4902 = vmatpush1.bf16.msra.mxu0 %v6713_v28  ;;  %v1753_v44 = vpop.f32.mrb[3].mxu1  ;;  %v6761_v28 = vld [vmem:[%s7708_s3 + $0x378] ss:$20 sps:$4 sm:$0xff]   ;;  %v6773_v38 = vld [vmem:[%s7708_s3 + $0x3c8] ss:$20 sps:$4 sm:$0xff]  }
 0x1db   : > { %4903 = vmatprep.subr.bf16.mxu0 %v6721_v29  ;;  %v5642_v45 = vmul.f32 -1.442695, %v6167_v42  ;;  %v6766_v29 = vld [vmem:[%s7708_s3 + $0x39c] ss:$20 sps:$4 sm:$0xff]   ;;  %v6764_v33 = vld [vmem:[%s7708_s3 + $0x398] ss:$20 sps:$4 sm:$0xff]  }
 0x1dc   : > { %v6772_v35 = vld [vmem:[%s7708_s3 + $0x3c4] ss:$20 sps:$4 sm:$0xff]   ;;  %v6778_v40 = vld [vmem:[%s7708_s3 + $0x3ec] ss:$20 sps:$4 sm:$0xff]   ;;  %v6781_v41 = vld [vmem:[%s7708_s3 + $0x3f4] ss:$20 sps:$4 sm:$0xff]  }
 0x1dd   : > { %7190 = vpow2.f32 %v5642_v45  ;;  %v6779_v43 = vld [vmem:[%s7708_s3 + $0x3f0] ss:$20 sps:$4 sm:$0xff]   ;;  %v6784_v44 = vld [vmem:[%s7708_s3 + $0x414] ss:$20 sps:$4 sm:$0xff]  }
 0x1de   : > { %4904 = vmatpush1.bf16.msra.mxu0 %v6719_v36  ;;  %v6775_v36 = vld [vmem:[%s7708_s3 + $0x3cc] ss:$20 sps:$4 sm:$0xff]   ;;  %v6787_v45 = vld [vmem:[%s7708_s3 + $0x41c] ss:$20 sps:$4 sm:$0xff]  }
 0x1df   : > { %4914 = vmatprep.subr.bf16.mxu0 %v6727_v37  ;;  %v6770_v37 = vld [vmem:[%s7708_s3 + $0x3c0] ss:$20 sps:$4 sm:$0xff]  }
 0x1e3   : > { %v7187_v46 = vpop.eup %7186 }
 0x1e4   : > { %v7189_v47 = vpop.eup %7188  ;;  %v2031_v48 = vadd.f32 1.0, %v7187_v46  ;;  %v6782_v46 = vld [vmem:[%s7708_s3 + $0x410] ss:$20 sps:$4 sm:$0xff]  }
 0x1e5   : > { %v2032_v49 = vadd.f32 1.0, %v7189_v47  ;;  %v6785_v47 = vld [vmem:[%s7708_s3 + $0x418] ss:$20 sps:$4 sm:$0xff]  }
 0x1e6   : > { %7192 = vrcp.f32 %v2031_v48  ;;  %v6790_v48 = vld [vmem:[%s7708_s3 + $0x43c] ss:$20 sps:$4 sm:$0xff]  }
 0x1e7   : > { %7194 = vrcp.f32 %v2032_v49  ;;  %v7191_v50 = vpop.eup %7190 }
 0x1e8   : > { %v2034_v51 = vadd.f32 1.0, %v7191_v50  ;;  %v6793_v50 = vld [vmem:[%s7708_s3 + $0x444] ss:$20 sps:$4 sm:$0xff]  }
 0x1ea   : > { %7196 = vrcp.f32 %v2034_v51  ;;  %v549_v51 = vsub.s32 5, %v7800_v12 }
 0x1f0   : > { %v7193_v0 = vpop.eup %7192 }
 0x1f1   : > { %v7195_v52 = vpop.eup %7194  ;;  %v2061_v6 = vmul.f32 %v7193_v0, %v6164_v26  ;;  %v6763_v26 = vld [vmem:[%s7708_s3 + $0x37c] ss:$20 sps:$4 sm:$0xff]   ;;  %v6788_v0 = vld [vmem:[%s7708_s3 + $0x438] ss:$20 sps:$4 sm:$0xff]  }
 0x1f2   : > { %v2062_v53 = vmul.f32 %v7195_v52, %v6165_v30  ;;  %v5641_v30 = vmul.f32 -1.442695, %v7869_v24 }
 0x1f3   : > { %v7834_v56 = vpack.c.bf16 %v2061_v6, %v2061_v6  ;;  %v6791_v6 = vld [vmem:[%s7708_s3 + $0x440] ss:$20 sps:$4 sm:$0xff]  }
 0x1f4   : > { %v7832_v55 = vpack.c.bf16 %v2062_v53, %v2062_v53  ;;  %v7197_v63 = vpop.eup %7196  ;;  %7198 = vpow2.f32 %v5641_v30  ;;  %v6796_v53 = vld [vmem:[%s7708_s3 + $0x464] ss:$20 sps:$4 sm:$0xff]  }
 0x1f5   : > { %v2064_v1 = vmul.f32 %v7197_v63, %v6167_v42  ;;  %v6776_v42 = vld [vmem:[%s7708_s3 + $0x3e8] ss:$20 sps:$4 sm:$0xff]  }
 0x1f6   : > { %4700 = vmatprep.mubr.bf16.mxu1 %v7832_v55  ;;  %4905 = vmatprep.mubr.bf16.mxu0 %v7832_v55 }
 0x1f7   : > { %4701 = vmatmul.mubr.bf16.vlgmr.msra.gmra.mrb[8].mxu1 %v7834_v56  ;;  %4906 = vmatmul.mubr.bf16.vlgmr.msra.gmra.mrb[12].mxu0 %v7834_v56  ;;  %v7849_v4 = vpack.c.bf16 %v2064_v1, %v2064_v1 }
 0x1f8   : > { %4710 = vmatpush1.bf16.msra.mxu1 %v6722_v54  ;;  %4915 = vmatpush1.bf16.msra.mxu0 %v6725_v39  ;;  %v6799_v54 = vld [vmem:[%s7708_s3 + $0x46c] ss:$20 sps:$4 sm:$0xff]   ;;  %v550_v39 = vrot.slane %v7804_v15, %v549_v51 }
 0x1f9   : > { %4711 = vmatprep.subr.bf16.mxu1 %v6730_v57  ;;  %4916 = vmatprep.subr.bf16.mxu0 %v6733_v58  ;;  %v6794_v57 = vld [vmem:[%s7708_s3 + $0x460] ss:$20 sps:$4 sm:$0xff]   ;;  %v6797_v58 = vld [vmem:[%s7708_s3 + $0x468] ss:$20 sps:$4 sm:$0xff]  }
 0x1fa   : > { %4741 = vmatprep.mubr.bf16.mxu1 %v7849_v4  ;;  %4946 = vmatprep.mubr.bf16.mxu0 %v7849_v4 }
 0x1fc   : > { %4712 = vmatpush1.bf16.msra.mxu1 %v6728_v60  ;;  %4917 = vmatpush1.bf16.msra.mxu0 %v6731_v61  ;;  %v6802_v61 = vld [vmem:[%s7708_s3 + $0x48c] ss:$20 sps:$4 sm:$0xff]  }
 0x1fd   : > { %4713 = vmatprep.subr.bf16.mxu1 %v6736_v18  ;;  %4918 = vmatprep.subr.bf16.mxu0 %v6739_v62  ;;  %v6805_v18 = vld [vmem:[%s7708_s3 + $0x494] ss:$20 sps:$4 sm:$0xff]  }
 0x1fe   : > { %v7199_v49 = vpop.eup %7198 }
 0x1ff   : > { %v2033_v52 = vadd.f32 1.0, %v7199_v49  ;;  %v6844_v49 = vld [vmem:[%s7708_s3 + $0x5a4] ss:$20 sps:$4 sm:$0xff]  }
 0x200   : > { %4714 = vmatpush1.bf16.msra.mxu1 %v6734_v2  ;;  %4919 = vmatpush1.bf16.msra.mxu0 %v6737_v3  ;;  %v6800_v3 = vld [vmem:[%s7708_s3 + $0x488] ss:$20 sps:$4 sm:$0xff]  }
 0x201   : > { %4715 = vmatprep.subr.bf16.mxu1 %v6742_v5  ;;  %4920 = vmatprep.subr.bf16.mxu0 %v6745_v7  ;;  %7200 = vrcp.f32 %v2033_v52  ;;  %v6803_v5 = vld [vmem:[%s7708_s3 + $0x490] ss:$20 sps:$4 sm:$0xff]  }
 0x204   : > { %4716 = vmatpush1.bf16.msra.mxu1 %v6740_v8  ;;  %4921 = vmatpush1.bf16.msra.mxu0 %v6743_v9  ;;  %v6808_v8 = vld [vmem:[%s7708_s3 + $0x4b4] ss:$20 sps:$4 sm:$0xff]   ;;  %v6811_v9 = vld [vmem:[%s7708_s3 + $0x4bc] ss:$20 sps:$4 sm:$0xff]  }
 0x205   : > { %4717 = vmatprep.subr.bf16.mxu1 %v6748_v10  ;;  %4922 = vmatprep.subr.bf16.mxu0 %v6751_v11  ;;  %v6806_v10 = vld [vmem:[%s7708_s3 + $0x4b0] ss:$20 sps:$4 sm:$0xff]   ;;  %v6809_v11 = vld [vmem:[%s7708_s3 + $0x4b8] ss:$20 sps:$4 sm:$0xff]  }
 0x208   : > { %4718 = vmatpush1.bf16.msra.mxu1 %v6746_v13  ;;  %4923 = vmatpush1.bf16.msra.mxu0 %v6749_v14  ;;  %v6814_v13 = vld [vmem:[%s7708_s3 + $0x4dc] ss:$20 sps:$4 sm:$0xff]   ;;  %v6817_v14 = vld [vmem:[%s7708_s3 + $0x4e4] ss:$20 sps:$4 sm:$0xff]  }
 0x209   : > { %4719 = vmatprep.subr.bf16.mxu1 %v6754_v19  ;;  %4924 = vmatprep.subr.bf16.mxu0 %v6757_v21 }
 0x20b   : > { %v7201_v19 = vpop.eup %7200 }
 0x20c   : > { %4720 = vmatpush1.bf16.msra.mxu1 %v6752_v22  ;;  %4925 = vmatpush1.bf16.msra.mxu0 %v6755_v23  ;;  %v6812_v23 = vld [vmem:[%s7708_s3 + $0x4d8] ss:$20 sps:$4 sm:$0xff]  }
 0x20d   : > { %4721 = vmatprep.subr.bf16.mxu1 %v6760_v25  ;;  %4926 = vmatprep.subr.bf16.mxu0 %v6763_v26  ;;  %v6815_v25 = vld [vmem:[%s7708_s3 + $0x4e0] ss:$20 sps:$4 sm:$0xff]  }
 0x210   : > { %4722 = vmatpush1.bf16.msra.mxu1 %v6758_v27  ;;  %4927 = vmatpush1.bf16.msra.mxu0 %v6761_v28  ;;  %v2063_v27 = vmul.f32 %v7201_v19, %v7869_v24  ;;  %v6820_v28 = vld [vmem:[%s7708_s3 + $0x504] ss:$20 sps:$4 sm:$0xff]   ;;  %v6826_v24 = vld [vmem:[%s7708_s3 + $0x52c] ss:$20 sps:$4 sm:$0xff]  }
 0x211   : > { %4723 = vmatprep.subr.bf16.mxu1 %v6766_v29  ;;  %4928 = vmatprep.subr.bf16.mxu0 %v6769_v31  ;;  %v6823_v29 = vld [vmem:[%s7708_s3 + $0x50c] ss:$20 sps:$4 sm:$0xff]  }
 0x212   : > { %v6818_v31 = vld [vmem:[%s7708_s3 + $0x500] ss:$20 sps:$4 sm:$0xff]  }
 0x213   : > { %v6866_v19 = vld [vmem:[%s7708_s3 + $0x640] ss:$20 sps:$4 sm:$0xff]  }
 0x214   : > { %4724 = vmatpush1.bf16.msra.mxu1 %v6764_v33  ;;  %4929 = vmatpush1.bf16.msra.mxu0 %v6767_v34  ;;  %v6821_v33 = vld [vmem:[%s7708_s3 + $0x508] ss:$20 sps:$4 sm:$0xff]   ;;  %v7928_v34 = vpack.c.bf16 %v2063_v27, %v2063_v27 }
 0x215   : > { %4725 = vmatprep.subr.bf16.mxu1 %v6772_v35  ;;  %4930 = vmatprep.subr.bf16.mxu0 %v6775_v36  ;;  %v6829_v36 = vld [vmem:[%s7708_s3 + $0x534] ss:$20 sps:$4 sm:$0xff]  }
 0x216   : > { %v6880_v27 = vld [vmem:[%s7708_s3 + $0x694] ss:$20 sps:$4 sm:$0xff]  }
 0x218   : > { %4726 = vmatpush1.bf16.msra.mxu1 %v6770_v37  ;;  %4931 = vmatpush1.bf16.msra.mxu0 %v6773_v38  ;;  %v6824_v37 = vld [vmem:[%s7708_s3 + $0x528] ss:$20 sps:$4 sm:$0xff]   ;;  %v6827_v38 = vld [vmem:[%s7708_s3 + $0x530] ss:$20 sps:$4 sm:$0xff]  }
 0x219   : > { %4727 = vmatprep.subr.bf16.mxu1 %v6778_v40  ;;  %4932 = vmatprep.subr.bf16.mxu0 %v6781_v41  ;;  %v6832_v40 = vld [vmem:[%s7708_s3 + $0x554] ss:$20 sps:$4 sm:$0xff]   ;;  %v6835_v41 = vld [vmem:[%s7708_s3 + $0x55c] ss:$20 sps:$4 sm:$0xff]  }
 0x21c   : > { %4728 = vmatpush1.bf16.msra.mxu1 %v6776_v42  ;;  %4933 = vmatpush1.bf16.msra.mxu0 %v6779_v43  ;;  %v6830_v42 = vld [vmem:[%s7708_s3 + $0x550] ss:$20 sps:$4 sm:$0xff]   ;;  %v6833_v43 = vld [vmem:[%s7708_s3 + $0x558] ss:$20 sps:$4 sm:$0xff]  }
 0x21d   : > { %4729 = vmatprep.subr.bf16.mxu1 %v6784_v44  ;;  %4934 = vmatprep.subr.bf16.mxu0 %v6787_v45  ;;  %v6838_v44 = vld [vmem:[%s7708_s3 + $0x57c] ss:$20 sps:$4 sm:$0xff]   ;;  %v6841_v45 = vld [vmem:[%s7708_s3 + $0x584] ss:$20 sps:$4 sm:$0xff]  }
 0x220   : > { %4730 = vmatpush1.bf16.msra.mxu1 %v6782_v46  ;;  %4935 = vmatpush1.bf16.msra.mxu0 %v6785_v47  ;;  %v6836_v46 = vld [vmem:[%s7708_s3 + $0x578] ss:$20 sps:$4 sm:$0xff]   ;;  %v6839_v47 = vld [vmem:[%s7708_s3 + $0x580] ss:$20 sps:$4 sm:$0xff]  }
 0x221   : > { %4731 = vmatprep.subr.bf16.mxu1 %v6790_v48  ;;  %4936 = vmatprep.subr.bf16.mxu0 %v6793_v50  ;;  %v6847_v50 = vld [vmem:[%s7708_s3 + $0x5ac] ss:$20 sps:$4 sm:$0xff]  }
 0x224   : > { %4732 = vmatpush1.bf16.msra.mxu1 %v6788_v0  ;;  %4937 = vmatpush1.bf16.msra.mxu0 %v6791_v6  ;;  %v7902_v60 = vpop.f32.mrb[4].mxu0  ;;  %v545_v0 = vsub.s32 4, %v7800_v12  ;;  %v6842_v6 = vld [vmem:[%s7708_s3 + $0x5a0] ss:$20 sps:$4 sm:$0xff]  }
 0x225   : > { %4733 = vmatprep.subr.bf16.mxu1 %v6796_v53  ;;  %4938 = vmatprep.subr.bf16.mxu0 %v6799_v54  ;;  %v1832_v62 = vpop.f32.mrb[5].mxu0  ;;  %v6845_v53 = vld [vmem:[%s7708_s3 + $0x5a8] ss:$20 sps:$4 sm:$0xff]   ;;  %v557_v54 = vsub.s32 7, %v7800_v12 }
 0x226   : > { %v7906_v63 = vadd.f32 %v1832_v62, %v550_v39  ;;  %v1834_v1 = vpop.f32.mrb[6].mxu0  ;;  %v6850_v39 = vld [vmem:[%s7708_s3 + $0x5cc] ss:$20 sps:$4 sm:$0xff]  }
 0x227   : > { %v1835_v2 = vpop.f32.mrb[7].mxu0  ;;  %v7917_v17 = vpop.f32.mrb[4].mxu1  ;;  %v558_v62 = vrot.slane %v7804_v15, %v557_v54  ;;  %v6859_v1 = vld [vmem:[%s7708_s3 + $0x5fc] ss:$20 sps:$4 sm:$0xff]   ;;  %v6913_v54 = vld [vmem:[%s7708_s3 + $0x764] ss:$20 sps:$4 sm:$0xff]  }
 0x228   : > { %4734 = vmatpush1.bf16.msra.mxu1 %v6794_v57  ;;  %4939 = vmatpush1.bf16.msra.mxu0 %v6797_v58  ;;  %v5644_v7 = vmul.f32 -1.442695, %v7906_v63  ;;  %v7919_v21 = vpop.f32.mrb[5].mxu1  ;;  %v6853_v57 = vld [vmem:[%s7708_s3 + $0x5d4] ss:$20 sps:$4 sm:$0xff]   ;;  %v546_v58 = vrot.slane %v7804_v15, %v545_v0 }
 0x229   : > { %4735 = vmatprep.subr.bf16.mxu1 %v6802_v61  ;;  %4940 = vmatprep.subr.bf16.mxu0 %v6805_v18  ;;  %v1916_v22 = vpop.f32.mrb[6].mxu1  ;;  %v6848_v61 = vld [vmem:[%s7708_s3 + $0x5c8] ss:$20 sps:$4 sm:$0xff]   ;;  %v6851_v18 = vld [vmem:[%s7708_s3 + $0x5d0] ss:$20 sps:$4 sm:$0xff]  }
 0x22a   : > { %7202 = vpow2.f32 %v5644_v7  ;;  %v1917_v26 = vpop.f32.mrb[7].mxu1  ;;  %v7966_v2 = vadd.f32 %v7902_v60, %v546_v58  ;;  %v7971_v7 = vadd.f32 %v7919_v21, %v558_v62  ;;  %v6862_v15 = vld [vmem:[%s7708_s3 + $0x61c] ss:$20 sps:$4 sm:$0xff]   ;;  %v6860_v60 = vld [vmem:[%s7708_s3 + $0x618] ss:$20 sps:$4 sm:$0xff]  }
 0x22b   : > { %v6869_v21 = vld [vmem:[%s7708_s3 + $0x648] ss:$20 sps:$4 sm:$0xff]   ;;  %v6874_v22 = vld [vmem:[%s7708_s3 + $0x66c] ss:$20 sps:$4 sm:$0xff]   ;;  %v6875_v26 = vld [vmem:[%s7708_s3 + $0x670] ss:$20 sps:$4 sm:$0xff]  }
 0x22c   : > { %4736 = vmatpush1.bf16.msra.mxu1 %v6800_v3  ;;  %4941 = vmatpush1.bf16.msra.mxu0 %v6803_v5  ;;  %v6854_v3 = vld [vmem:[%s7708_s3 + $0x5f0] ss:$20 sps:$4 sm:$0xff]   ;;  %v6857_v5 = vld [vmem:[%s7708_s3 + $0x5f8] ss:$20 sps:$4 sm:$0xff]  }
 0x22d   : > { %4737 = vmatprep.subr.bf16.mxu1 %v6808_v8  ;;  %4942 = vmatprep.subr.bf16.mxu0 %v6811_v9  ;;  %v6865_v8 = vld [vmem:[%s7708_s3 + $0x624] ss:$20 sps:$4 sm:$0xff]   ;;  %v5643_v9 = vmul.f32 -1.442695, %v7966_v2 }
 0x22e   : > { %v6908_v58 = vld [vmem:[%s7708_s3 + $0x758] ss:$20 sps:$4 sm:$0xff]  }
 0x22f   : > { %v6916_v62 = vld [vmem:[%s7708_s3 + $0x784] ss:$20 sps:$4 sm:$0xff]  }
 0x230   : > { %4738 = vmatpush1.bf16.msra.mxu1 %v6806_v10  ;;  %4943 = vmatpush1.bf16.msra.mxu0 %v6809_v11  ;;  %v6863_v10 = vld [vmem:[%s7708_s3 + $0x620] ss:$20 sps:$4 sm:$0xff]   ;;  %v5646_v11 = vmul.f32 -1.442695, %v7971_v7 }
 0x231   : > { %4739 = vmatprep.subr.bf16.mxu1 %v6814_v13  ;;  %4944 = vmatprep.subr.bf16.mxu0 %v6817_v14  ;;  %v6868_v13 = vld [vmem:[%s7708_s3 + $0x644] ss:$20 sps:$4 sm:$0xff]   ;;  %v6871_v14 = vld [vmem:[%s7708_s3 + $0x64c] ss:$20 sps:$4 sm:$0xff]  }
 0x234   : > { %v7203_v30 = vpop.eup %7202  ;;  %4740 = vmatpush1.bf16.msra.mxu1 %v6812_v23  ;;  %4945 = vmatpush1.bf16.msra.mxu0 %v6815_v25  ;;  %v6877_v23 = vld [vmem:[%s7708_s3 + $0x674] ss:$20 sps:$4 sm:$0xff]  }
 0x235   : > { %v2036_v35 = vadd.f32 1.0, %v7203_v30  ;;  %4750 = vmatprep.subr.bf16.mxu1 %v6820_v28  ;;  %4955 = vmatprep.subr.bf16.mxu0 %v6823_v29  ;;  %v6872_v25 = vld [vmem:[%s7708_s3 + $0x668] ss:$20 sps:$4 sm:$0xff]   ;;  %v6878_v29 = vld [vmem:[%s7708_s3 + $0x690] ss:$20 sps:$4 sm:$0xff]  }
 0x236   : > { %v6883_v28 = vld [vmem:[%s7708_s3 + $0x69c] ss:$20 sps:$4 sm:$0xff]   ;;  %v6881_v30 = vld [vmem:[%s7708_s3 + $0x698] ss:$20 sps:$4 sm:$0xff]  }
 0x237   : > { %7204 = vrcp.f32 %v2036_v35  ;;  %4742 = vmatmul.mubr.bf16.vlgmr.msra.gmra.mrb[8].mxu1 %v7928_v34  ;;  %4947 = vmatmul.mubr.bf16.vlgmr.msra.gmra.mrb[12].mxu0 %v7928_v34  ;;  %v6889_v35 = vld [vmem:[%s7708_s3 + $0x6c4] ss:$20 sps:$4 sm:$0xff]  }
 0x238   : > { %4751 = vmatpush1.bf16.msra.mxu1 %v6818_v31  ;;  %4956 = vmatpush1.bf16.msra.mxu0 %v6821_v33  ;;  %7206 = vpow2.f32 %v5643_v9  ;;  %v6886_v33 = vld [vmem:[%s7708_s3 + $0x6bc] ss:$20 sps:$4 sm:$0xff]   ;;  %v6925_v9 = vld [vmem:[%s7708_s3 + $0x7b4] ss:$20 sps:$4 sm:$0xff]  }
 0x239   : > { %4752 = vmatprep.subr.bf16.mxu1 %v6826_v24  ;;  %4957 = vmatprep.subr.bf16.mxu0 %v6829_v36  ;;  %7208 = vpow2.f32 %v5646_v11 }
 0x23c   : > { %4753 = vmatpush1.bf16.msra.mxu1 %v6824_v37  ;;  %4958 = vmatpush1.bf16.msra.mxu0 %v6827_v38  ;;  %v6884_v37 = vld [vmem:[%s7708_s3 + $0x6b8] ss:$20 sps:$4 sm:$0xff]   ;;  %v6887_v38 = vld [vmem:[%s7708_s3 + $0x6c0] ss:$20 sps:$4 sm:$0xff]  }
 0x23d   : > { %4754 = vmatprep.subr.bf16.mxu1 %v6832_v40  ;;  %4959 = vmatprep.subr.bf16.mxu0 %v6835_v41  ;;  %v6892_v41 = vld [vmem:[%s7708_s3 + $0x6e4] ss:$20 sps:$4 sm:$0xff]  }
 0x240   : > { %4755 = vmatpush1.bf16.msra.mxu1 %v6830_v42  ;;  %4960 = vmatpush1.bf16.msra.mxu0 %v6833_v43  ;;  %v6895_v42 = vld [vmem:[%s7708_s3 + $0x6ec] ss:$20 sps:$4 sm:$0xff]  }
 0x241   : > { %v7205_v48 = vpop.eup %7204  ;;  %4756 = vmatprep.subr.bf16.mxu1 %v6838_v44  ;;  %4961 = vmatprep.subr.bf16.mxu0 %v6841_v45  ;;  %v6890_v43 = vld [vmem:[%s7708_s3 + $0x6e0] ss:$20 sps:$4 sm:$0xff]   ;;  %v6893_v44 = vld [vmem:[%s7708_s3 + $0x6e8] ss:$20 sps:$4 sm:$0xff]  }
 0x242   : > { %v2066_v51 = vmul.f32 %v7205_v48, %v7906_v63  ;;  %v6856_v63 = vld [vmem:[%s7708_s3 + $0x5f4] ss:$20 sps:$4 sm:$0xff]   ;;  %v7207_v31 = vpop.eup %7206  ;;  %v6898_v45 = vld [vmem:[%s7708_s3 + $0x70c] ss:$20 sps:$4 sm:$0xff]   ;;  %v6899_v48 = vld [vmem:[%s7708_s3 + $0x710] ss:$20 sps:$4 sm:$0xff]  }
 0x243   : > { %v7209_v24 = vpop.eup %7208  ;;  %v2035_v36 = vadd.f32 1.0, %v7207_v31  ;;  %v553_v31 = vsub.s32 6, %v7800_v12 }
 0x244   : > { %v7948_v52 = vpack.c.bf16 %v2066_v51, %v2066_v51  ;;  %4757 = vmatpush1.bf16.msra.mxu1 %v6836_v46  ;;  %4962 = vmatpush1.bf16.msra.mxu0 %v6839_v47  ;;  %v2038_v40 = vadd.f32 1.0, %v7209_v24  ;;  %v6901_v46 = vld [vmem:[%s7708_s3 + $0x714] ss:$20 sps:$4 sm:$0xff]   ;;  %v6902_v51 = vld [vmem:[%s7708_s3 + $0x730] ss:$20 sps:$4 sm:$0xff]  }
 0x245   : > { %4758 = vmatprep.subr.bf16.mxu1 %v6844_v49  ;;  %4963 = vmatprep.subr.bf16.mxu0 %v6847_v50  ;;  %7210 = vrcp.f32 %v2035_v36  ;;  %v6896_v47 = vld [vmem:[%s7708_s3 + $0x708] ss:$20 sps:$4 sm:$0xff]   ;;  %v6946_v24 = vld [vmem:[%s7708_s3 + $0x84c] ss:$20 sps:$4 sm:$0xff]  }
 0x246   : > { %4782 = vmatprep.mubr.bf16.mxu1 %v7948_v52  ;;  %4987 = vmatprep.mubr.bf16.mxu0 %v7948_v52  ;;  %7212 = vrcp.f32 %v2038_v40  ;;  %v6904_v49 = vld [vmem:[%s7708_s3 + $0x734] ss:$20 sps:$4 sm:$0xff]   ;;  %v6907_v50 = vld [vmem:[%s7708_s3 + $0x73c] ss:$20 sps:$4 sm:$0xff]  }
 0x247   : > { %v6949_v36 = vld [vmem:[%s7708_s3 + $0x854] ss:$20 sps:$4 sm:$0xff]  }
 0x248   : > { %4759 = vmatpush1.bf16.msra.mxu1 %v6842_v6  ;;  %4964 = vmatpush1.bf16.msra.mxu0 %v6845_v53  ;;  %v6905_v6 = vld [vmem:[%s7708_s3 + $0x738] ss:$20 sps:$4 sm:$0xff]   ;;  %v6910_v53 = vld [vmem:[%s7708_s3 + $0x75c] ss:$20 sps:$4 sm:$0xff]  }
 0x249   : > { %4760 = vmatprep.subr.bf16.mxu1 %v6850_v39  ;;  %4965 = vmatprep.subr.bf16.mxu0 %v6853_v57 }
 0x24c   : > { %4761 = vmatpush1.bf16.msra.mxu1 %v6848_v61  ;;  %4966 = vmatpush1.bf16.msra.mxu0 %v6851_v18  ;;  %v6911_v61 = vld [vmem:[%s7708_s3 + $0x760] ss:$20 sps:$4 sm:$0xff]  }
 0x24d   : > { %4762 = vmatprep.subr.bf16.mxu1 %v6856_v63  ;;  %4967 = vmatprep.subr.bf16.mxu0 %v6859_v1  ;;  %v6919_v63 = vld [vmem:[%s7708_s3 + $0x78c] ss:$20 sps:$4 sm:$0xff]  }
 0x24f   : > { %v7211_v39 = vpop.eup %7210 }
 0x250   : > { %4763 = vmatpush1.bf16.msra.mxu1 %v6854_v3  ;;  %4968 = vmatpush1.bf16.msra.mxu0 %v6857_v5  ;;  %v7213_v57 = vpop.eup %7212  ;;  %v2065_v18 = vmul.f32 %v7211_v39, %v7966_v2  ;;  %v6914_v3 = vld [vmem:[%s7708_s3 + $0x780] ss:$20 sps:$4 sm:$0xff]   ;;  %v6917_v5 = vld [vmem:[%s7708_s3 + $0x788] ss:$20 sps:$4 sm:$0xff]   ;;  %v6964_v39 = vld [vmem:[%s7708_s3 + $0x8c4] ss:$20 sps:$4 sm:$0xff]  }
 0x251   : > { %4764 = vmatprep.subr.bf16.mxu1 %v6862_v15  ;;  %4969 = vmatprep.subr.bf16.mxu0 %v6865_v8  ;;  %v2068_v1 = vmul.f32 %v7213_v57, %v7971_v7  ;;  %v6922_v2 = vld [vmem:[%s7708_s3 + $0x7ac] ss:$20 sps:$4 sm:$0xff]  }
 0x252   : > { %v8019_v8 = vpack.c.bf16 %v2065_v18, %v2065_v18  ;;  %v6967_v57 = vld [vmem:[%s7708_s3 + $0x8cc] ss:$20 sps:$4 sm:$0xff]  }
 0x253   : > { %v6970_v18 = vld [vmem:[%s7708_s3 + $0x8ec] ss:$20 sps:$4 sm:$0xff]  }
 0x254   : > { %4765 = vmatpush1.bf16.msra.mxu1 %v6860_v60  ;;  %4970 = vmatpush1.bf16.msra.mxu0 %v6863_v10  ;;  %v8023_v10 = vpack.c.bf16 %v2068_v1, %v2068_v1  ;;  %v6971_v1 = vld [vmem:[%s7708_s3 + $0x8f0] ss:$20 sps:$4 sm:$0xff]  }
 0x255   : > { %4766 = vmatprep.subr.bf16.mxu1 %v6868_v13  ;;  %4971 = vmatprep.subr.bf16.mxu0 %v6871_v14  ;;  %v6920_v13 = vld [vmem:[%s7708_s3 + $0x7a8] ss:$20 sps:$4 sm:$0xff]   ;;  %v6923_v14 = vld [vmem:[%s7708_s3 + $0x7b0] ss:$20 sps:$4 sm:$0xff]  }
 0x258   : > { %4767 = vmatpush1.bf16.msra.mxu1 %v6866_v19  ;;  %4972 = vmatpush1.bf16.msra.mxu0 %v6869_v21  ;;  %v6928_v19 = vld [vmem:[%s7708_s3 + $0x7d4] ss:$20 sps:$4 sm:$0xff]   ;;  %v6931_v21 = vld [vmem:[%s7708_s3 + $0x7dc] ss:$20 sps:$4 sm:$0xff]  }
 0x259   : > { %4768 = vmatprep.subr.bf16.mxu1 %v6874_v22  ;;  %4973 = vmatprep.subr.bf16.mxu0 %v6877_v23  ;;  %v6926_v22 = vld [vmem:[%s7708_s3 + $0x7d0] ss:$20 sps:$4 sm:$0xff]   ;;  %v6929_v23 = vld [vmem:[%s7708_s3 + $0x7d8] ss:$20 sps:$4 sm:$0xff]  }
 0x25c   : > { %4769 = vmatpush1.bf16.msra.mxu1 %v6872_v25  ;;  %4974 = vmatpush1.bf16.msra.mxu0 %v6875_v26  ;;  %v6934_v25 = vld [vmem:[%s7708_s3 + $0x7fc] ss:$20 sps:$4 sm:$0xff]   ;;  %v6937_v26 = vld [vmem:[%s7708_s3 + $0x804] ss:$20 sps:$4 sm:$0xff]  }
 0x25d   : > { %4770 = vmatprep.subr.bf16.mxu1 %v6880_v27  ;;  %4975 = vmatprep.subr.bf16.mxu0 %v6883_v28  ;;  %v6932_v27 = vld [vmem:[%s7708_s3 + $0x7f8] ss:$20 sps:$4 sm:$0xff]   ;;  %v6935_v28 = vld [vmem:[%s7708_s3 + $0x800] ss:$20 sps:$4 sm:$0xff]  }
 0x260   : > { %4771 = vmatpush1.bf16.msra.mxu1 %v6878_v29  ;;  %4976 = vmatpush1.bf16.msra.mxu0 %v6881_v30  ;;  %v6940_v29 = vld [vmem:[%s7708_s3 + $0x824] ss:$20 sps:$4 sm:$0xff]   ;;  %v6943_v30 = vld [vmem:[%s7708_s3 + $0x82c] ss:$20 sps:$4 sm:$0xff]  }
 0x261   : > { %4772 = vmatprep.subr.bf16.mxu1 %v6886_v33  ;;  %4977 = vmatprep.subr.bf16.mxu0 %v6889_v35  ;;  %v6938_v33 = vld [vmem:[%s7708_s3 + $0x820] ss:$20 sps:$4 sm:$0xff]   ;;  %v6941_v35 = vld [vmem:[%s7708_s3 + $0x828] ss:$20 sps:$4 sm:$0xff]  }
 0x264   : > { %4773 = vmatpush1.bf16.msra.mxu1 %v6884_v37  ;;  %4978 = vmatpush1.bf16.msra.mxu0 %v6887_v38  ;;  %v8046_v37 = vld [vmem:[#allocation7 + $0x8] sm:$0x3]  ;;  %v7227_v38 = vld [vmem:[#allocation7] sm:$0xff] }
 0x265   : > { %4774 = vmatprep.subr.bf16.mxu1 %v6892_v41  ;;  %4979 = vmatprep.subr.bf16.mxu0 %v6895_v42  ;;  %v554_v40 = vrot.slane %v7227_v38, %v553_v31  ;;  %v6944_v41 = vld [vmem:[%s7708_s3 + $0x848] ss:$20 sps:$4 sm:$0xff]   ;;  %v6947_v42 = vld [vmem:[%s7708_s3 + $0x850] ss:$20 sps:$4 sm:$0xff]  }
 0x266   : > { %v6995_v31 = vld [vmem:[%s7708_s3 + $0x990] ss:$20 sps:$4 sm:$0xff]  }
 0x267   : > { %v7006_v38 = vld [vmem:[%s7708_s3 + $0x9dc] ss:$20 sps:$4 sm:$0xff]  }
 0x268   : > { %4775 = vmatpush1.bf16.msra.mxu1 %v6890_v43  ;;  %4980 = vmatpush1.bf16.msra.mxu0 %v6893_v44  ;;  %v566_v43 = vrot.slane %v8046_v37, %v7812_v20  ;;  %v6952_v44 = vld [vmem:[%s7708_s3 + $0x874] ss:$20 sps:$4 sm:$0xff]  }
 0x269   : > { %4776 = vmatprep.subr.bf16.mxu1 %v6898_v45  ;;  %4981 = vmatprep.subr.bf16.mxu0 %v6901_v46  ;;  %v6955_v45 = vld [vmem:[%s7708_s3 + $0x87c] ss:$20 sps:$4 sm:$0xff]   ;;  %v8055_v46 = vadd.f32 %v7917_v17, %v554_v40  ;;  %v6956_v17 = vld [vmem:[%s7708_s3 + $0x898] ss:$20 sps:$4 sm:$0xff]  }
 0x26a   : > { %v7009_v40 = vld [vmem:[%s7708_s3 + $0x9e4] ss:$20 sps:$4 sm:$0xff]  }
 0x26c   : > { %4777 = vmatpush1.bf16.msra.mxu1 %v6896_v47  ;;  %4982 = vmatpush1.bf16.msra.mxu0 %v6899_v48  ;;  %v6950_v47 = vld [vmem:[%s7708_s3 + $0x870] ss:$20 sps:$4 sm:$0xff]   ;;  %v6953_v48 = vld [vmem:[%s7708_s3 + $0x878] ss:$20 sps:$4 sm:$0xff]  }
 0x26d   : > { %4778 = vmatprep.subr.bf16.mxu1 %v6904_v49  ;;  %4983 = vmatprep.subr.bf16.mxu0 %v6907_v50  ;;  %v6958_v50 = vld [vmem:[%s7708_s3 + $0x89c] ss:$20 sps:$4 sm:$0xff]  }
 0x270   : > { %4779 = vmatpush1.bf16.msra.mxu1 %v6902_v51  ;;  %4984 = vmatpush1.bf16.msra.mxu0 %v6905_v6  ;;  %v6961_v51 = vld [vmem:[%s7708_s3 + $0x8a4] ss:$20 sps:$4 sm:$0xff]   ;;  %v5645_v6 = vmul.f32 -1.442695, %v8055_v46 }
 0x271   : > { %4780 = vmatprep.subr.bf16.mxu1 %v6910_v53  ;;  %4985 = vmatprep.subr.bf16.mxu0 %v6913_v54  ;;  %v6959_v53 = vld [vmem:[%s7708_s3 + $0x8a0] ss:$20 sps:$4 sm:$0xff]  }
 0x272   : > { %7214 = vpow2.f32 %v5645_v6  ;;  %v7013_v6 = vld [vmem:[%s7708_s3 + $0xa08] ss:$20 sps:$4 sm:$0xff]  }
 0x274   : > { %4781 = vmatpush1.bf16.msra.mxu1 %v6908_v58  ;;  %4986 = vmatpush1.bf16.msra.mxu0 %v6911_v61  ;;  %v8017_v15 = vpop.f32.mrb[8].mxu0  ;;  %v6962_v58 = vld [vmem:[%s7708_s3 + $0x8c0] ss:$20 sps:$4 sm:$0xff]   ;;  %v6965_v61 = vld [vmem:[%s7708_s3 + $0x8c8] ss:$20 sps:$4 sm:$0xff]  }
 0x275   : > { %4791 = vmatprep.subr.bf16.mxu1 %v6916_v62  ;;  %4996 = vmatprep.subr.bf16.mxu0 %v6919_v63  ;;  %v1996_v60 = vpop.f32.mrb[9].mxu0  ;;  %v6973_v62 = vld [vmem:[%s7708_s3 + $0x8f4] ss:$20 sps:$4 sm:$0xff]  }
 0x276   : > { %v1998_v7 = vpop.f32.mrb[10].mxu0  ;;  %v8059_v49 = vadd.f32 %v1996_v60, %v566_v43  ;;  %v6968_v63 = vld [vmem:[%s7708_s3 + $0x8e8] ss:$20 sps:$4 sm:$0xff]   ;;  %v7004_v43 = vld [vmem:[%s7708_s3 + $0x9d8] ss:$20 sps:$4 sm:$0xff]  }
 0x277   : > { %4783 = vmatmul.mubr.bf16.vlgmr.msra.gmra.mrb[8].mxu1 %v8019_v8  ;;  %4988 = vmatmul.mubr.bf16.vlgmr.msra.gmra.mrb[12].mxu0 %v8019_v8  ;;  %v1999_v11 = vpop.f32.mrb[11].mxu0  ;;  %v6982_v7 = vld [vmem:[%s7708_s3 + $0x93c] ss:$20 sps:$4 sm:$0xff]  }
 0x278   : > { %4792 = vmatpush1.bf16.msra.mxu1 %v6914_v3  ;;  %4997 = vmatpush1.bf16.msra.mxu0 %v6917_v5  ;;  %v5648_v54 = vmul.f32 -1.442695, %v8059_v49  ;;  %v6976_v3 = vld [vmem:[%s7708_s3 + $0x914] ss:$20 sps:$4 sm:$0xff]   ;;  %v6979_v5 = vld [vmem:[%s7708_s3 + $0x91c] ss:$20 sps:$4 sm:$0xff]  }
 0x279   : > { %4793 = vmatprep.subr.bf16.mxu1 %v6922_v2  ;;  %4998 = vmatprep.subr.bf16.mxu0 %v6925_v9  ;;  %v6974_v2 = vld [vmem:[%s7708_s3 + $0x910] ss:$20 sps:$4 sm:$0xff]   ;;  %v6977_v9 = vld [vmem:[%s7708_s3 + $0x918] ss:$20 sps:$4 sm:$0xff]  }
 0x27a   : > { %4823 = vmatprep.mubr.bf16.mxu1 %v8023_v10  ;;  %5028 = vmatprep.mubr.bf16.mxu0 %v8023_v10  ;;  %7216 = vpow2.f32 %v5648_v54  ;;  %v6985_v11 = vld [vmem:[%s7708_s3 + $0x944] ss:$20 sps:$4 sm:$0xff]  }
 0x27c   : > { %4794 = vmatpush1.bf16.msra.mxu1 %v6920_v13  ;;  %4999 = vmatpush1.bf16.msra.mxu0 %v6923_v14  ;;  %v7215_v60 = vpop.eup %7214 }
 0x27d   : > { %4795 = vmatprep.subr.bf16.mxu1 %v6928_v19  ;;  %5000 = vmatprep.subr.bf16.mxu0 %v6931_v21  ;;  %v2037_v14 = vadd.f32 1.0, %v7215_v60  ;;  %v6980_v19 = vld [vmem:[%s7708_s3 + $0x938] ss:$20 sps:$4 sm:$0xff]   ;;  %v6983_v21 = vld [vmem:[%s7708_s3 + $0x940] ss:$20 sps:$4 sm:$0xff]  }
 0x27e   : > { %v7037_v60 = vld [vmem:[%s7708_s3 + $0xaa8] ss:$20 sps:$4 sm:$0xff]  }
 0x27f   : > { %7218 = vrcp.f32 %v2037_v14  ;;  %v7040_v14 = vld [vmem:[%s7708_s3 + $0xac8] ss:$20 sps:$4 sm:$0xff]  }
 0x280   : > { %4796 = vmatpush1.bf16.msra.mxu1 %v6926_v22  ;;  %5001 = vmatpush1.bf16.msra.mxu0 %v6929_v23  ;;  %v6988_v22 = vld [vmem:[%s7708_s3 + $0x964] ss:$20 sps:$4 sm:$0xff]   ;;  %v6991_v23 = vld [vmem:[%s7708_s3 + $0x96c] ss:$20 sps:$4 sm:$0xff]  }
 0x281   : > { %4797 = vmatprep.subr.bf16.mxu1 %v6934_v25  ;;  %5002 = vmatprep.subr.bf16.mxu0 %v6937_v26  ;;  %v6986_v26 = vld [vmem:[%s7708_s3 + $0x960] ss:$20 sps:$4 sm:$0xff]  }
 0x284   : > { %4798 = vmatpush1.bf16.msra.mxu1 %v6932_v27  ;;  %5003 = vmatpush1.bf16.msra.mxu0 %v6935_v28  ;;  %v7217_v13 = vpop.eup %7216  ;;  %v6989_v27 = vld [vmem:[%s7708_s3 + $0x968] ss:$20 sps:$4 sm:$0xff]   ;;  %v6994_v28 = vld [vmem:[%s7708_s3 + $0x98c] ss:$20 sps:$4 sm:$0xff]  }
 0x285   : > { %4799 = vmatprep.subr.bf16.mxu1 %v6940_v29  ;;  %5004 = vmatprep.subr.bf16.mxu0 %v6943_v30  ;;  %v2040_v25 = vadd.f32 1.0, %v7217_v13  ;;  %v6997_v29 = vld [vmem:[%s7708_s3 + $0x994] ss:$20 sps:$4 sm:$0xff]   ;;  %v562_v13 = vrot.slane %v8046_v37, %v7807_v16  ;;  %v7046_v37 = vld [vmem:[%s7708_s3 + $0xaf0] ss:$20 sps:$4 sm:$0xff]  }
 0x286   : > { %v6992_v30 = vld [vmem:[%s7708_s3 + $0x988] ss:$20 sps:$4 sm:$0xff]  }
 0x287   : > { %7220 = vrcp.f32 %v2040_v25  ;;  %v7049_v25 = vld [vmem:[%s7708_s3 + $0xaf8] ss:$20 sps:$4 sm:$0xff]  }
 0x288   : > { %4800 = vmatpush1.bf16.msra.mxu1 %v6938_v33  ;;  %5005 = vmatpush1.bf16.msra.mxu0 %v6941_v35  ;;  %v7000_v33 = vld [vmem:[%s7708_s3 + $0x9b4] ss:$20 sps:$4 sm:$0xff]   ;;  %v7003_v35 = vld [vmem:[%s7708_s3 + $0x9bc] ss:$20 sps:$4 sm:$0xff]  }
 0x289   : > { %4801 = vmatprep.subr.bf16.mxu1 %v6946_v24  ;;  %5006 = vmatprep.subr.bf16.mxu0 %v6949_v36  ;;  %v6998_v24 = vld [vmem:[%s7708_s3 + $0x9b0] ss:$20 sps:$4 sm:$0xff]   ;;  %v7001_v36 = vld [vmem:[%s7708_s3 + $0x9b8] ss:$20 sps:$4 sm:$0xff]  }
 0x28c   : > { %4802 = vmatpush1.bf16.msra.mxu1 %v6944_v41  ;;  %5007 = vmatpush1.bf16.msra.mxu0 %v6947_v42  ;;  %v7219_v41 = vpop.eup %7218 }
 0x28d   : > { %4803 = vmatprep.subr.bf16.mxu1 %v6952_v44  ;;  %5008 = vmatprep.subr.bf16.mxu0 %v6955_v45  ;;  %v7007_v44 = vld [vmem:[%s7708_s3 + $0x9e0] ss:$20 sps:$4 sm:$0xff]   ;;  %v2067_v45 = vmul.f32 %v7219_v41, %v8055_v46 }
 0x28e   : > { %v7021_v46 = vld [vmem:[%s7708_s3 + $0xa34] ss:$20 sps:$4 sm:$0xff]  }
 0x28f   : > { %v7072_v41 = vld [vmem:[%s7708_s3 + $0xb94] ss:$20 sps:$4 sm:$0xff]  }
 0x290   : > { %4804 = vmatpush1.bf16.msra.mxu1 %v6950_v47  ;;  %5009 = vmatpush1.bf16.msra.mxu0 %v6953_v48  ;;  %v7012_v47 = vld [vmem:[%s7708_s3 + $0xa04] ss:$20 sps:$4 sm:$0xff]   ;;  %v7015_v48 = vld [vmem:[%s7708_s3 + $0xa0c] ss:$20 sps:$4 sm:$0xff]  }
 0x291   : > { %4805 = vmatprep.subr.bf16.mxu1 %v6958_v50  ;;  %5010 = vmatprep.subr.bf16.mxu0 %v6961_v51  ;;  %v7221_v42 = vpop.eup %7220  ;;  %v7010_v51 = vld [vmem:[%s7708_s3 + $0xa00] ss:$20 sps:$4 sm:$0xff]  }
 0x292   : > { %v2070_v50 = vmul.f32 %v7221_v42, %v8059_v49  ;;  %v7016_v49 = vld [vmem:[%s7708_s3 + $0xa28] ss:$20 sps:$4 sm:$0xff]  }
 0x293   : > { %v7075_v42 = vld [vmem:[%s7708_s3 + $0xb9c] ss:$20 sps:$4 sm:$0xff]  }
 0x294   : > { %4806 = vmatpush1.bf16.msra.mxu1 %v6956_v17  ;;  %5011 = vmatpush1.bf16.msra.mxu0 %v6959_v53  ;;  %v8105_v17 = vpack.c.bf16 %v2067_v45, %v2067_v45  ;;  %v7018_v53 = vld [vmem:[%s7708_s3 + $0xa2c] ss:$20 sps:$4 sm:$0xff]   ;;  %v8109_v54 = vpack.c.bf16 %v2070_v50, %v2070_v50 }
 0x295   : > { %4807 = vmatprep.subr.bf16.mxu1 %v6964_v39  ;;  %5012 = vmatprep.subr.bf16.mxu0 %v6967_v57  ;;  %v7019_v39 = vld [vmem:[%s7708_s3 + $0xa30] ss:$20 sps:$4 sm:$0xff]   ;;  %v7024_v57 = vld [vmem:[%s7708_s3 + $0xa54] ss:$20 sps:$4 sm:$0xff]  }
 0x298   : > { %4808 = vmatpush1.bf16.msra.mxu1 %v6962_v58  ;;  %5013 = vmatpush1.bf16.msra.mxu0 %v6965_v61  ;;  %v7027_v58 = vld [vmem:[%s7708_s3 + $0xa5c] ss:$20 sps:$4 sm:$0xff]  }
 0x299   : > { %4809 = vmatprep.subr.bf16.mxu1 %v6970_v18  ;;  %5014 = vmatprep.subr.bf16.mxu0 %v6973_v62  ;;  %v7022_v61 = vld [vmem:[%s7708_s3 + $0xa50] ss:$20 sps:$4 sm:$0xff]   ;;  %v7025_v18 = vld [vmem:[%s7708_s3 + $0xa58] ss:$20 sps:$4 sm:$0xff]  }
 0x29a   : > { %v7030_v62 = vld [vmem:[%s7708_s3 + $0xa7c] ss:$20 sps:$4 sm:$0xff]  }
 0x29c   : > { %4810 = vmatpush1.bf16.msra.mxu1 %v6968_v63  ;;  %5015 = vmatpush1.bf16.msra.mxu0 %v6971_v1  ;;  %v7033_v63 = vld [vmem:[%s7708_s3 + $0xa84] ss:$20 sps:$4 sm:$0xff]  }
 0x29d   : > { %4811 = vmatprep.subr.bf16.mxu1 %v6976_v3  ;;  %5016 = vmatprep.subr.bf16.mxu0 %v6979_v5  ;;  %v7028_v1 = vld [vmem:[%s7708_s3 + $0xa78] ss:$20 sps:$4 sm:$0xff]   ;;  %v7031_v3 = vld [vmem:[%s7708_s3 + $0xa80] ss:$20 sps:$4 sm:$0xff]  }
 0x29e   : > { %v7036_v5 = vld [vmem:[%s7708_s3 + $0xaa4] ss:$20 sps:$4 sm:$0xff]  }
 0x2a0   : > { %4812 = vmatpush1.bf16.msra.mxu1 %v6974_v2  ;;  %5017 = vmatpush1.bf16.msra.mxu0 %v6977_v9  ;;  %v7039_v2 = vld [vmem:[%s7708_s3 + $0xaac] ss:$20 sps:$4 sm:$0xff]  }
 0x2a1   : > { %4813 = vmatprep.subr.bf16.mxu1 %v6982_v7  ;;  %5018 = vmatprep.subr.bf16.mxu0 %v6985_v11  ;;  %v7034_v9 = vld [vmem:[%s7708_s3 + $0xaa0] ss:$20 sps:$4 sm:$0xff]  }
 0x2a2   : > { %v7042_v7 = vld [vmem:[%s7708_s3 + $0xacc] ss:$20 sps:$4 sm:$0xff]   ;;  %v7045_v11 = vld [vmem:[%s7708_s3 + $0xad4] ss:$20 sps:$4 sm:$0xff]  }
 0x2a4   : > { %4814 = vmatpush1.bf16.msra.mxu1 %v6980_v19  ;;  %5019 = vmatpush1.bf16.msra.mxu0 %v6983_v21  ;;  %v7043_v19 = vld [vmem:[%s7708_s3 + $0xad0] ss:$20 sps:$4 sm:$0xff]   ;;  %v7048_v21 = vld [vmem:[%s7708_s3 + $0xaf4] ss:$20 sps:$4 sm:$0xff]  }
 0x2a5   : > { %4815 = vmatprep.subr.bf16.mxu1 %v6988_v22  ;;  %5020 = vmatprep.subr.bf16.mxu0 %v6991_v23  ;;  %v7051_v22 = vld [vmem:[%s7708_s3 + $0xafc] ss:$20 sps:$4 sm:$0xff]   ;;  %v8138_v23 = vadd.f32 %v8017_v15, %v562_v13  ;;  %v7052_v15 = vld [vmem:[%s7708_s3 + $0xb18] ss:$20 sps:$4 sm:$0xff]  }
 0x2a6   : > { %v7106_v13 = vld [vmem:[%s7708_s3 + $0x150] ss:$20 sps:$4 sm:$0xff]  }
 0x2a8   : > { %4816 = vmatpush1.bf16.msra.mxu1 %v6986_v26  ;;  %5021 = vmatpush1.bf16.msra.mxu0 %v6989_v27  ;;  %v7054_v26 = vld [vmem:[%s7708_s3 + $0xb1c] ss:$20 sps:$4 sm:$0xff]   ;;  %v7057_v27 = vld [vmem:[%s7708_s3 + $0xb24] ss:$20 sps:$4 sm:$0xff]  }
 0x2a9   : > { %4817 = vmatprep.subr.bf16.mxu1 %v6994_v28  ;;  %5022 = vmatprep.subr.bf16.mxu0 %v6997_v29  ;;  %v5647_v28 = vmul.f32 -1.442695, %v8138_v23  ;;  %v7055_v29 = vld [vmem:[%s7708_s3 + $0xb20] ss:$20 sps:$4 sm:$0xff]  }
 0x2ab   : > { %7222 = vpow2.f32 %v5647_v28  ;;  %v7115_v28 = vld [vmem:[%s7708_s3 + $0x920] ss:$20 sps:$4 sm:$0xff]  }
 0x2ac   : > { %4818 = vmatpush1.bf16.msra.mxu1 %v6992_v30  ;;  %5023 = vmatpush1.bf16.msra.mxu0 %v6995_v31  ;;  %v7060_v30 = vld [vmem:[%s7708_s3 + $0xb44] ss:$20 sps:$4 sm:$0xff]   ;;  %v7063_v31 = vld [vmem:[%s7708_s3 + $0xb4c] ss:$20 sps:$4 sm:$0xff]  }
 0x2ad   : > { %4819 = vmatprep.subr.bf16.mxu1 %v7000_v33  ;;  %5024 = vmatprep.subr.bf16.mxu0 %v7003_v35  ;;  %v7058_v33 = vld [vmem:[%s7708_s3 + $0xb40] ss:$20 sps:$4 sm:$0xff]   ;;  %v7061_v35 = vld [vmem:[%s7708_s3 + $0xb48] ss:$20 sps:$4 sm:$0xff]  }
 0x2b0   : > { %4820 = vmatpush1.bf16.msra.mxu1 %v6998_v24  ;;  %5025 = vmatpush1.bf16.msra.mxu0 %v7001_v36  ;;  %v7066_v24 = vld [vmem:[%s7708_s3 + $0xb6c] ss:$20 sps:$4 sm:$0xff]   ;;  %v7069_v36 = vld [vmem:[%s7708_s3 + $0xb74] ss:$20 sps:$4 sm:$0xff]  }
 0x2b1   : > { %4821 = vmatprep.subr.bf16.mxu1 %v7006_v38  ;;  %5026 = vmatprep.subr.bf16.mxu0 %v7009_v40  ;;  %v7064_v38 = vld [vmem:[%s7708_s3 + $0xb68] ss:$20 sps:$4 sm:$0xff]   ;;  %v7067_v40 = vld [vmem:[%s7708_s3 + $0xb70] ss:$20 sps:$4 sm:$0xff]  }
 0x2b4   : > { %4822 = vmatpush1.bf16.msra.mxu1 %v7004_v43  ;;  %5027 = vmatpush1.bf16.msra.mxu0 %v7007_v44  ;;  %v7070_v43 = vld [vmem:[%s7708_s3 + $0xb90] ss:$20 sps:$4 sm:$0xff]   ;;  %v7073_v44 = vld [vmem:[%s7708_s3 + $0xb98] ss:$20 sps:$4 sm:$0xff]  }
 0x2b5   : > { %4832 = vmatprep.subr.bf16.mxu1 %v7012_v47  ;;  %5037 = vmatprep.subr.bf16.mxu0 %v7015_v48  ;;  %v7223_v45 = vpop.eup %7222  ;;  %v7078_v47 = vld [vmem:[%s7708_s3 + $0xbbc] ss:$20 sps:$4 sm:$0xff]   ;;  %v7081_v48 = vld [vmem:[%s7708_s3 + $0xbc4] ss:$20 sps:$4 sm:$0xff]  }
 0x2b6   : > { %v2039_v50 = vadd.f32 1.0, %v7223_v45  ;;  %v7132_v45 = vld [vmem:[%s7708_s3 + $0x100] ss:$20 sps:$4 sm:$0xff]  }
 0x2b7   : > { %4824 = vmatmul.mubr.bf16.vlgmr.msra.gmra.mrb[8].mxu1 %v8105_v17  ;;  %5029 = vmatmul.mubr.bf16.vlgmr.msra.gmra.mrb[12].mxu0 %v8105_v17 }
 0x2b8   : > { %4833 = vmatpush1.bf16.msra.mxu1 %v7010_v51  ;;  %5038 = vmatpush1.bf16.msra.mxu0 %v7013_v6  ;;  %v7076_v51 = vld [vmem:[%s7708_s3 + $0xbb8] ss:$20 sps:$4 sm:$0xff]   ;;  %v7079_v6 = vld [vmem:[%s7708_s3 + $0xbc0] ss:$20 sps:$4 sm:$0xff]   ;;  %7224 = vrcp.f32 %v2039_v50  ;;  %v7135_v50 = vld [vmem:[%s7708_s3 + $0x9e8] ss:$20 sps:$4 sm:$0xff]  }
 0x2b9   : > { %4834 = vmatprep.subr.bf16.mxu1 %v7018_v53  ;;  %5039 = vmatprep.subr.bf16.mxu0 %v7021_v46  ;;  %v7084_v53 = vld [vmem:[%s7708_s3 + $0xbe4] ss:$20 sps:$4 sm:$0xff]   ;;  %v7087_v46 = vld [vmem:[%s7708_s3 + $0xbec] ss:$20 sps:$4 sm:$0xff]  }
 0x2ba   : > { %4864 = vmatprep.mubr.bf16.mxu1 %v8109_v54  ;;  %5069 = vmatprep.mubr.bf16.mxu0 %v8109_v54 }
 0x2bc   : > { %4835 = vmatpush1.bf16.msra.mxu1 %v7016_v49  ;;  %5040 = vmatpush1.bf16.msra.mxu0 %v7019_v39  ;;  %v7082_v49 = vld [vmem:[%s7708_s3 + $0xbe0] ss:$20 sps:$4 sm:$0xff]   ;;  %v7085_v39 = vld [vmem:[%s7708_s3 + $0xbe8] ss:$20 sps:$4 sm:$0xff]  }
 0x2bd   : > { %4836 = vmatprep.subr.bf16.mxu1 %v7024_v57  ;;  %5041 = vmatprep.subr.bf16.mxu0 %v7027_v58  ;;  %v7090_v57 = vld [vmem:[%s7708_s3 + $0xc0c] ss:$20 sps:$4 sm:$0xff]   ;;  %v7093_v58 = vld [vmem:[%s7708_s3 + $0xc14] ss:$20 sps:$4 sm:$0xff]  }
 0x2c0   : > { %4837 = vmatpush1.bf16.msra.mxu1 %v7022_v61  ;;  %5042 = vmatpush1.bf16.msra.mxu0 %v7025_v18  ;;  %v7088_v61 = vld [vmem:[%s7708_s3 + $0xc08] ss:$20 sps:$4 sm:$0xff]   ;;  %v7091_v18 = vld [vmem:[%s7708_s3 + $0xc10] ss:$20 sps:$4 sm:$0xff]  }
 0x2c1   : > { %4838 = vmatprep.subr.bf16.mxu1 %v7030_v62  ;;  %5043 = vmatprep.subr.bf16.mxu0 %v7033_v63  ;;  %v7096_v62 = vld [vmem:[%s7708_s3 + $0xc34] ss:$20 sps:$4 sm:$0xff]   ;;  %v7099_v63 = vld [vmem:[%s7708_s3 + $0xc3c] ss:$20 sps:$4 sm:$0xff]  }
 0x2c4   : > { %4839 = vmatpush1.bf16.msra.mxu1 %v7028_v1  ;;  %5044 = vmatpush1.bf16.msra.mxu0 %v7031_v3  ;;  %v7094_v1 = vld [vmem:[%s7708_s3 + $0xc30] ss:$20 sps:$4 sm:$0xff]   ;;  %v7097_v3 = vld [vmem:[%s7708_s3 + $0xc38] ss:$20 sps:$4 sm:$0xff]  }
 0x2c5   : > { %4840 = vmatprep.subr.bf16.mxu1 %v7036_v5  ;;  %5045 = vmatprep.subr.bf16.mxu0 %v7039_v2  ;;  %v7102_v5 = vld [vmem:[%s7708_s3 + $0xc5c] ss:$20 sps:$4 sm:$0xff]   ;;  %v7105_v2 = vld [vmem:[%s7708_s3 + $0xc64] ss:$20 sps:$4 sm:$0xff]  }
 0x2c8   : > { %4841 = vmatpush1.bf16.msra.mxu1 %v7034_v9  ;;  %5046 = vmatpush1.bf16.msra.mxu0 %v7037_v60  ;;  %v7225_v9 = vpop.eup %7224  ;;  %v7100_v60 = vld [vmem:[%s7708_s3 + $0xc58] ss:$20 sps:$4 sm:$0xff]  }
 0x2c9   : > { %4842 = vmatprep.subr.bf16.mxu1 %v7042_v7  ;;  %5047 = vmatprep.subr.bf16.mxu0 %v7045_v11  ;;  %v7103_v7 = vld [vmem:[%s7708_s3 + $0xc60] ss:$20 sps:$4 sm:$0xff]   ;;  %v2069_v11 = vmul.f32 %v7225_v9, %v8138_v23  ;;  %v7112_v23 = vld [vmem:[%s7708_s3 + $0x38] ss:$20 sps:$4 sm:$0xff]   ;;  %v7155_v9 = vld [vmem:[%s7708_s3 + $0x510] ss:$20 sps:$4 sm:$0xff]  }
 0x2cc   : > { %4843 = vmatpush1.bf16.msra.mxu1 %v7040_v14  ;;  %5048 = vmatpush1.bf16.msra.mxu0 %v7043_v19  ;;  %v7107_v14 = vld [vmem:[%s7708_s3 + $0x8d0] ss:$20 sps:$4 sm:$0xff]  }
 0x2cd   : > { %4844 = vmatprep.subr.bf16.mxu1 %v7048_v21  ;;  %5049 = vmatprep.subr.bf16.mxu0 %v7051_v22  ;;  %v7108_v19 = vld [vmem:[%s7708_s3 + $0x10] ss:$20 sps:$4 sm:$0xff]   ;;  %v8183_v21 = vpack.c.bf16 %v2069_v11, %v2069_v11  ;;  %v7158_v11 = vld [vmem:[%s7708_s3 + $0x6a0] ss:$20 sps:$4 sm:$0xff]  }
 0x2ce   : > { %v7109_v22 = vld [vmem:[%s7708_s3 + $0x790] ss:$20 sps:$4 sm:$0xff]  }
 0x2d0   : > { %4845 = vmatpush1.bf16.msra.mxu1 %v7046_v37  ;;  %5050 = vmatpush1.bf16.msra.mxu0 %v7049_v25  ;;  %v7110_v37 = vld [vmem:[%s7708_s3 + $0x178] ss:$20 sps:$4 sm:$0xff]  }
 0x2d1   : > { %4846 = vmatprep.subr.bf16.mxu1 %v7054_v26  ;;  %5051 = vmatprep.subr.bf16.mxu0 %v7057_v27  ;;  %v7111_v25 = vld [vmem:[%s7708_s3 + $0x8f8] ss:$20 sps:$4 sm:$0xff]   ;;  %v7114_v27 = vld [vmem:[%s7708_s3 + $0x1a0] ss:$20 sps:$4 sm:$0xff]  }
 0x2d2   : > { %v7113_v26 = vld [vmem:[%s7708_s3 + $0x7b8] ss:$20 sps:$4 sm:$0xff]  }
 0x2d4   : > { %4847 = vmatpush1.bf16.msra.mxu1 %v7052_v15  ;;  %5052 = vmatpush1.bf16.msra.mxu0 %v7055_v29  ;;  %v7116_v15 = vld [vmem:[%s7708_s3 + $0x60] ss:$20 sps:$4 sm:$0xff]   ;;  %v7118_v29 = vld [vmem:[%s7708_s3 + $0x1c8] ss:$20 sps:$4 sm:$0xff]  }
 0x2d5   : > { %4848 = vmatprep.subr.bf16.mxu1 %v7060_v30  ;;  %5053 = vmatprep.subr.bf16.mxu0 %v7063_v31  ;;  %v7119_v30 = vld [vmem:[%s7708_s3 + $0x948] ss:$20 sps:$4 sm:$0xff]  }
 0x2d6   : > { %v7121_v31 = vld [vmem:[%s7708_s3 + $0x808] ss:$20 sps:$4 sm:$0xff]  }
 0x2d8   : > { %4849 = vmatpush1.bf16.msra.mxu1 %v7058_v33  ;;  %5054 = vmatpush1.bf16.msra.mxu0 %v7061_v35  ;;  %v7122_v33 = vld [vmem:[%s7708_s3 + $0x1f0] ss:$20 sps:$4 sm:$0xff]  }
 0x2d9   : > { %4850 = vmatprep.subr.bf16.mxu1 %v7066_v24  ;;  %5055 = vmatprep.subr.bf16.mxu0 %v7069_v36  ;;  %v7123_v35 = vld [vmem:[%s7708_s3 + $0x970] ss:$20 sps:$4 sm:$0xff]  }
 0x2da   : > { %v7124_v24 = vld [vmem:[%s7708_s3 + $0xb0] ss:$20 sps:$4 sm:$0xff]  }
 0x2db   : > { %v7125_v36 = vld [vmem:[%s7708_s3 + $0x830] ss:$20 sps:$4 sm:$0xff]  }
 0x2dc   : > { %4851 = vmatpush1.bf16.msra.mxu1 %v7064_v38  ;;  %5056 = vmatpush1.bf16.msra.mxu0 %v7067_v40  ;;  %v7126_v38 = vld [vmem:[%s7708_s3 + $0x218] ss:$20 sps:$4 sm:$0xff]  }
 0x2dd   : > { %4852 = vmatprep.subr.bf16.mxu1 %v7072_v41  ;;  %5057 = vmatprep.subr.bf16.mxu0 %v7075_v42  ;;  %v7127_v40 = vld [vmem:[%s7708_s3 + $0x998] ss:$20 sps:$4 sm:$0xff]  }
 0x2de   : > { %v7128_v41 = vld [vmem:[%s7708_s3 + $0xd8] ss:$20 sps:$4 sm:$0xff]  }
 0x2df   : > { %v7129_v42 = vld [vmem:[%s7708_s3 + $0x858] ss:$20 sps:$4 sm:$0xff]  }
 0x2e0   : > { %4853 = vmatpush1.bf16.msra.mxu1 %v7070_v43  ;;  %5058 = vmatpush1.bf16.msra.mxu0 %v7073_v44  ;;  %v7130_v43 = vld [vmem:[%s7708_s3 + $0x240] ss:$20 sps:$4 sm:$0xff]  }
 0x2e1   : > { %4854 = vmatprep.subr.bf16.mxu1 %v7078_v47  ;;  %5059 = vmatprep.subr.bf16.mxu0 %v7081_v48  ;;  %v7131_v44 = vld [vmem:[%s7708_s3 + $0x9c0] ss:$20 sps:$4 sm:$0xff]   ;;  %v7134_v48 = vld [vmem:[%s7708_s3 + $0x268] ss:$20 sps:$4 sm:$0xff]  }
 0x2e2   : > { %v7133_v47 = vld [vmem:[%s7708_s3 + $0x880] ss:$20 sps:$4 sm:$0xff]  }
 0x2e4   : > { %4855 = vmatpush1.bf16.msra.mxu1 %v7076_v51  ;;  %5060 = vmatpush1.bf16.msra.mxu0 %v7079_v6  ;;  %v7136_v51 = vld [vmem:[%s7708_s3 + $0x128] ss:$20 sps:$4 sm:$0xff]  }
 0x2e5   : > { %4856 = vmatprep.subr.bf16.mxu1 %v7084_v53  ;;  %5061 = vmatprep.subr.bf16.mxu0 %v7087_v46  ;;  %v7137_v6 = vld [vmem:[%s7708_s3 + $0x8a8] ss:$20 sps:$4 sm:$0xff]   ;;  %v7138_v53 = vld [vmem:[%s7708_s3 + $0x3d0] ss:$20 sps:$4 sm:$0xff]  }
 0x2e6   : > { %v7139_v46 = vld [vmem:[%s7708_s3 + $0x290] ss:$20 sps:$4 sm:$0xff]  }
 0x2e8   : > { %4857 = vmatpush1.bf16.msra.mxu1 %v7082_v49  ;;  %5062 = vmatpush1.bf16.msra.mxu0 %v7085_v39  ;;  %v7140_v49 = vld [vmem:[%s7708_s3 + $0x3f8] ss:$20 sps:$4 sm:$0xff]  }
 0x2e9   : > { %4858 = vmatprep.subr.bf16.mxu1 %v7090_v57  ;;  %5063 = vmatprep.subr.bf16.mxu0 %v7093_v58  ;;  %v7141_v39 = vld [vmem:[%s7708_s3 + $0x2b8] ss:$20 sps:$4 sm:$0xff]   ;;  %v7142_v57 = vld [vmem:[%s7708_s3 + $0x420] ss:$20 sps:$4 sm:$0xff]  }
 0x2ea   : > { %v7143_v58 = vld [vmem:[%s7708_s3 + $0x2e0] ss:$20 sps:$4 sm:$0xff]  }
 0x2ec   : > { %4859 = vmatpush1.bf16.msra.mxu1 %v7088_v61  ;;  %5064 = vmatpush1.bf16.msra.mxu0 %v7091_v18  ;;  %v7144_v61 = vld [vmem:[%s7708_s3 + $0x448] ss:$20 sps:$4 sm:$0xff]   ;;  %v7147_v18 = vld [vmem:[%s7708_s3 + $0x330] ss:$20 sps:$4 sm:$0xff]  }
 0x2ed   : > { %4860 = vmatprep.subr.bf16.mxu1 %v7096_v62  ;;  %5065 = vmatprep.subr.bf16.mxu0 %v7099_v63  ;;  %v7149_v62 = vld [vmem:[%s7708_s3 + $0x358] ss:$20 sps:$4 sm:$0xff]   ;;  %v7150_v63 = vld [vmem:[%s7708_s3 + $0x4c0] ss:$20 sps:$4 sm:$0xff]  }
 0x2f0   : > { %4861 = vmatpush1.bf16.msra.mxu1 %v7094_v1  ;;  %5066 = vmatpush1.bf16.msra.mxu0 %v7097_v3  ;;  %v7151_v1 = vld [vmem:[%s7708_s3 + $0x380] ss:$20 sps:$4 sm:$0xff]   ;;  %v7152_v3 = vld [vmem:[%s7708_s3 + $0x4e8] ss:$20 sps:$4 sm:$0xff]  }
 0x2f1   : > { %4862 = vmatprep.subr.bf16.mxu1 %v7102_v5  ;;  %5067 = vmatprep.subr.bf16.mxu0 %v7105_v2  ;;  %v7153_v5 = vld [vmem:[%s7708_s3 + $0x3a8] ss:$20 sps:$4 sm:$0xff]   ;;  %v7154_v2 = vld [vmem:[%s7708_s3 + $0x650] ss:$20 sps:$4 sm:$0xff]  }
 0x2f4   : > { %4863 = vmatpush1.bf16.msra.mxu1 %v7100_v60  ;;  %5068 = vmatpush1.bf16.msra.mxu0 %v7103_v7  ;;  %v7156_v60 = vld [vmem:[%s7708_s3 + $0x678] ss:$20 sps:$4 sm:$0xff]  }
 0x2f5   : > { %6054 = vmatprep.subr.bf16.mxu1 %v7106_v13  ;;  %6120 = vmatprep.subr.bf16.mxu0 %v7107_v14  ;;  %v7157_v7 = vld [vmem:[%s7708_s3 + $0x538] ss:$20 sps:$4 sm:$0xff]   ;;  %v7159_v13 = vld [vmem:[%s7708_s3 + $0x560] ss:$20 sps:$4 sm:$0xff]   ;;  %v7160_v14 = vld [vmem:[%s7708_s3 + $0x6c8] ss:$20 sps:$4 sm:$0xff]  }
 0x2f7   : > { %4865 = vmatmul.mubr.bf16.vlgmr.msra.gmra.mrb[8].mxu1 %v8183_v21  ;;  %5070 = vmatmul.mubr.bf16.vlgmr.msra.gmra.mrb[12].mxu0 %v8183_v21 }
 0x2f8   : > { %6055 = vmatpush3.bf16.msra.mxu1 %v7108_v19  ;;  %5110 = vmatprep.mubr.bf16.mxu1 %v7832_v55  ;;  %v7117_v55 = vld [vmem:[%s7708_s3 + $0x7e0] ss:$20 sps:$4 sm:$0xff]   ;;  %v7161_v19 = vld [vmem:[%s7708_s3 + $0x588] ss:$20 sps:$4 sm:$0xff]  }
 0x2f9   : > { %6121 = vmatpush3.bf16.msra.mxu0 %v7109_v22  ;;  %5230 = vmatprep.mubr.bf16.mxu0 %v8023_v10  ;;  %v7120_v10 = vld [vmem:[%s7708_s3 + $0x88] ss:$20 sps:$4 sm:$0xff]   ;;  %v7163_v22 = vld [vmem:[%s7708_s3 + $0x5b0] ss:$20 sps:$4 sm:$0xff]  }
 0x2fa   : > { %6056 = vmatprep.subr.bf16.mxu1 %v7110_v37  ;;  %6122 = vmatprep.subr.bf16.mxu0 %v7111_v25  ;;  %v7165_v37 = vld [vmem:[%s7708_s3 + $0x5d8] ss:$20 sps:$4 sm:$0xff]   ;;  %v7166_v25 = vld [vmem:[%s7708_s3 + $0x740] ss:$20 sps:$4 sm:$0xff]  }
 0x2fc   : > { %6057 = vmatpush3.bf16.msra.mxu1 %v7112_v23  ;;  %v7167_v23 = vld [vmem:[%s7708_s3 + $0x600] ss:$20 sps:$4 sm:$0xff]  }
 0x2fd   : > { %6123 = vmatpush3.bf16.msra.mxu0 %v7113_v26  ;;  %6058 = vmatprep.subr.bf16.mxu1 %v7114_v27  ;;  %v7168_v26 = vld [vmem:[%s7708_s3 + $0x768] ss:$20 sps:$4 sm:$0xff]  }
 0x2fe   : > { %6124 = vmatprep.subr.bf16.mxu0 %v7115_v28  ;;  %v7169_v27 = vld [vmem:[%s7708_s3 + $0x628] ss:$20 sps:$4 sm:$0xff]   ;;  %v7170_v28 = vld [vmem:[%s7708_s3 + $0xb50] ss:$20 sps:$4 sm:$0xff]  }
 0x300   : > { %6059 = vmatpush3.bf16.msra.mxu1 %v7116_v15  ;;  %v7171_v15 = vld [vmem:[%s7708_s3 + $0xa10] ss:$20 sps:$4 sm:$0xff]  }
 0x301   : > { %6125 = vmatpush3.bf16.msra.mxu0 %v7117_v55  ;;  %6060 = vmatprep.subr.bf16.mxu1 %v7118_v29  ;;  %v7172_v55 = vld [vmem:[%s7708_s3 + $0xb78] ss:$20 sps:$4 sm:$0xff]  }
 0x302   : > { %6126 = vmatprep.subr.bf16.mxu0 %v7119_v30  ;;  %v7173_v29 = vld [vmem:[%s7708_s3 + $0xa38] ss:$20 sps:$4 sm:$0xff]   ;;  %v7174_v30 = vld [vmem:[%s7708_s3 + $0xba0] ss:$20 sps:$4 sm:$0xff]  }
 0x304   : > { %6061 = vmatpush3.bf16.msra.mxu1 %v7120_v10  ;;  %v7175_v10 = vld [vmem:[%s7708_s3 + $0xa60] ss:$20 sps:$4 sm:$0xff]  }
 0x305   : > { %6127 = vmatpush3.bf16.msra.mxu0 %v7121_v31  ;;  %6062 = vmatprep.subr.bf16.mxu1 %v7122_v33  ;;  %v7176_v31 = vld [vmem:[%s7708_s3 + $0xbc8] ss:$20 sps:$4 sm:$0xff]  }
 0x306   : > { %6128 = vmatprep.subr.bf16.mxu0 %v7123_v35  ;;  %v7177_v33 = vld [vmem:[%s7708_s3 + $0xa88] ss:$20 sps:$4 sm:$0xff]   ;;  %v7179_v35 = vld [vmem:[%s7708_s3 + $0xab0] ss:$20 sps:$4 sm:$0xff]  }
 0x308   : > { %6063 = vmatpush3.bf16.msra.mxu1 %v7124_v24  ;;  %v7181_v24 = vld [vmem:[%s7708_s3 + $0xad8] ss:$20 sps:$4 sm:$0xff]  }
 0x309   : > { %6129 = vmatpush3.bf16.msra.mxu0 %v7125_v36  ;;  %6064 = vmatprep.subr.bf16.mxu1 %v7126_v38  ;;  %v7182_v36 = vld [vmem:[%s7708_s3 + $0xc40] ss:$20 sps:$4 sm:$0xff]  }
 0x30a   : > { %6130 = vmatprep.subr.bf16.mxu0 %v7127_v40  ;;  %v7183_v38 = vld [vmem:[%s7708_s3 + $0xb00] ss:$20 sps:$4 sm:$0xff]   ;;  %v7184_v40 = vld [vmem:[%s7708_s3 + $0xc68] ss:$20 sps:$4 sm:$0xff]  }
 0x30c   : > { %6065 = vmatpush3.bf16.msra.mxu1 %v7128_v41  ;;  %v7185_v41 = vld [vmem:[%s7708_s3 + $0xb28] ss:$20 sps:$4 sm:$0xff]  }
 0x30d   : > { %6131 = vmatpush3.bf16.msra.mxu0 %v7129_v42  ;;  %6066 = vmatprep.subr.bf16.mxu1 %v7130_v43  ;;  %v2561_v42 = vld [vmem:[%s286_s9] sm:$0x1f] }
 0x30e   : > { %6132 = vmatprep.subr.bf16.mxu0 %v7131_v44  ;;  %v2566_v43 = vrot.slane %v2561_v42, %v7807_v16  ;;  %v2574_v44 = vrot.slane %v2561_v42, %v537_v59 }
 0x310   : > { %6067 = vmatpush3.bf16.msra.mxu1 %v7132_v45  ;;  %v2570_v45 = vrot.slane %v2561_v42, %v7812_v20 }
 0x311   : > { %6133 = vmatpush3.bf16.msra.mxu0 %v7133_v47  ;;  %6068 = vmatprep.subr.bf16.mxu1 %v7134_v48  ;;  %v2578_v47 = vrot.slane %v2561_v42, %v541_v32 }
 0x312   : > { %6134 = vmatprep.subr.bf16.mxu0 %v7135_v50 }
 0x314   : > { %6069 = vmatpush3.bf16.msra.mxu1 %v7136_v51 }
 0x315   : > { %6135 = vmatpush3.bf16.msra.mxu0 %v7137_v6  ;;  %6076 = vmatprep.subr.bf16.mxu1 %v7138_v53 }
 0x317   : > { %5111 = vmatmul.mubr.bf16.vlgmr.msra.gmra.mrb[12].mxu1 %v7834_v56  ;;  %v7145_v56 = vld [vmem:[%s7708_s3 + $0x308] ss:$20 sps:$4 sm:$0xff]  }
 0x318   : > { %5231 = vmatmul.mubr.bf16.vlgmr.msra.gmra.mrb[16].mxu0 %v8105_v17  ;;  %6077 = vmatpush3.bf16.msra.mxu1 %v7139_v46  ;;  %v7146_v17 = vld [vmem:[%s7708_s3 + $0x470] ss:$20 sps:$4 sm:$0xff]  }
 0x319   : > { %5150 = vmatprep.mubr.bf16.mxu1 %v7849_v4  ;;  %6078 = vmatprep.subr.bf16.mxu1 %v7140_v49  ;;  %v7148_v4 = vld [vmem:[%s7708_s3 + $0x498] ss:$20 sps:$4 sm:$0xff]  }
 0x31c   : > { %6079 = vmatpush3.bf16.msra.mxu1 %v7141_v39 }
 0x31d   : > { %6080 = vmatprep.subr.bf16.mxu1 %v7142_v57 }
 0x320   : > { %6081 = vmatpush3.bf16.msra.mxu1 %v7143_v58 }
 0x321   : > { %6082 = vmatprep.subr.bf16.mxu1 %v7144_v61 }
 0x324   : > { %6083 = vmatpush3.bf16.msra.mxu1 %v7145_v56 }
 0x325   : > { %6084 = vmatprep.subr.bf16.mxu1 %v7146_v17 }
 0x328   : > { %6085 = vmatpush3.bf16.msra.mxu1 %v7147_v18 }
 0x329   : > { %6086 = vmatprep.subr.bf16.mxu1 %v7148_v4 }
 0x32c   : > { %6087 = vmatpush3.bf16.msra.mxu1 %v7149_v62 }
 0x32d   : > { %6088 = vmatprep.subr.bf16.mxu1 %v7150_v63 }
 0x330   : > { %6089 = vmatpush3.bf16.msra.mxu1 %v7151_v1  ;;  %v2582_v1 = vrot.slane %v2561_v42, %v545_v0 }
 0x331   : > { %6090 = vmatprep.subr.bf16.mxu1 %v7152_v3 }
 0x334   : > { %6091 = vmatpush3.bf16.msra.mxu1 %v7153_v5 }
 0x335   : > { %6098 = vmatprep.subr.bf16.mxu1 %v7154_v2 }
 0x337   : > { %5151 = vmatmul.mubr.bf16.vlgmr.msra.gmra.mrb[16].mxu1 %v7928_v34  ;;  %v7162_v34 = vld [vmem:[%s7708_s3 + $0x6f0] ss:$20 sps:$4 sm:$0xff]  }
 0x338   : > { %6099 = vmatpush3.bf16.msra.mxu1 %v7155_v9  ;;  %5190 = vmatprep.mubr.bf16.mxu1 %v7948_v52  ;;  %v7164_v52 = vld [vmem:[%s7708_s3 + $0x718] ss:$20 sps:$4 sm:$0xff]  }
 0x339   : > { %6100 = vmatprep.subr.bf16.mxu1 %v7156_v60 }
 0x33c   : > { %6101 = vmatpush3.bf16.msra.mxu1 %v7157_v7 }
 0x33d   : > { %6102 = vmatprep.subr.bf16.mxu1 %v7158_v11 }
 0x340   : > { %6103 = vmatpush3.bf16.msra.mxu1 %v7159_v13 }
 0x341   : > { %6104 = vmatprep.subr.bf16.mxu1 %v7160_v14 }
 0x344   : > { %6105 = vmatpush3.bf16.msra.mxu1 %v7161_v19 }
 0x345   : > { %6106 = vmatprep.subr.bf16.mxu1 %v7162_v34 }
 0x348   : > { %6107 = vmatpush3.bf16.msra.mxu1 %v7163_v22 }
 0x349   : > { %6108 = vmatprep.subr.bf16.mxu1 %v7164_v52 }
 0x34c   : > { %6109 = vmatpush3.bf16.msra.mxu1 %v7165_v37 }
 0x34d   : > { %6110 = vmatprep.subr.bf16.mxu1 %v7166_v25 }
 0x350   : > { %6111 = vmatpush3.bf16.msra.mxu1 %v7167_v23 }
 0x351   : > { %6112 = vmatprep.subr.bf16.mxu1 %v7168_v26 }
 0x354   : > { %6113 = vmatpush3.bf16.msra.mxu1 %v7169_v27 }
 0x355   : > { %6142 = vmatprep.subr.bf16.mxu1 %v7170_v28 }
 0x357   : > { %5191 = vmatmul.mubr.bf16.vlgmr.msra.gmra.mrb[20].mxu1 %v8019_v8  ;;  %v7178_v8 = vld [vmem:[%s7708_s3 + $0xbf0] ss:$20 sps:$4 sm:$0xff]  }
 0x358   : > { %6143 = vmatpush3.bf16.msra.mxu1 %v7171_v15  ;;  %5270 = vmatprep.mubr.bf16.mxu1 %v8109_v54  ;;  %v7180_v54 = vld [vmem:[%s7708_s3 + $0xc18] ss:$20 sps:$4 sm:$0xff]  }
 0x359   : > { %6144 = vmatprep.subr.bf16.mxu1 %v7172_v55 }
 0x35c   : > { %6145 = vmatpush3.bf16.msra.mxu1 %v7173_v29 }
 0x35d   : > { %6146 = vmatprep.subr.bf16.mxu1 %v7174_v30 }
 0x360   : > { %6147 = vmatpush3.bf16.msra.mxu1 %v7175_v10 }
 0x361   : > { %6148 = vmatprep.subr.bf16.mxu1 %v7176_v31 }
 0x364   : > { %6149 = vmatpush3.bf16.msra.mxu1 %v7177_v33 }
 0x365   : > { %6150 = vmatprep.subr.bf16.mxu1 %v7178_v8 }
 0x368   : > { %6151 = vmatpush3.bf16.msra.mxu1 %v7179_v35 }
 0x369   : > { %6152 = vmatprep.subr.bf16.mxu1 %v7180_v54 }
 0x36c   : > { %6153 = vmatpush3.bf16.msra.mxu1 %v7181_v24 }
 0x36d   : > { %6154 = vmatprep.subr.bf16.mxu1 %v7182_v36 }
 0x370   : > { %6155 = vmatpush3.bf16.msra.mxu1 %v7183_v38 }
 0x371   : > { %6156 = vmatprep.subr.bf16.mxu1 %v7184_v40 }
 0x374   : > { %6157 = vmatpush3.bf16.msra.mxu1 %v7185_v41 }
 0x377   : > { %5271 = vmatmul.mubr.bf16.vlgmr.msra.gmra.mrb[24].mxu1 %v8183_v21 }
 0x3ca   : > { %v4866_v48 = vpop.f32.mrb[8].mxu1  ;;  %v5071_v50 = vpop.f32.mrb[12].mxu0 }
 0x3cb   : > { %v6174_v51 = vadd.f32 %v4866_v48, %v2566_v43  ;;  %v6176_v6 = vadd.f32 %v5071_v50, %v2574_v44  ;;  %v4868_v53 = vpop.f32.mrb[9].mxu1  ;;  %v5073_v21 = vpop.f32.mrb[13].mxu0 }
 0x3cc   : > { %v6175_v46 = vadd.f32 %v4868_v53, %v2570_v45  ;;  %v6177_v49 = vadd.f32 %v5073_v21, %v2578_v47  ;;  %v4870_v39 = vpop.f32.mrb[10].mxu1  ;;  %v5075_v57 = vpop.f32.mrb[14].mxu0 }
 0x3cd   : > { %5278 = vst [vmem:[%s8282_s23] sm:$0xff] %v6174_v51  ;;  %5280 = vst [vmem:[%s8282_s23 + $0x10] sm:$0xff] %v6176_v6  ;;  %v4871_v16 = vpop.f32.mrb[11].mxu1  ;;  %v5076_v20 = vpop.f32.mrb[15].mxu0 }
 0x3ce   : > { %5279 = vst [vmem:[%s8282_s23 + $0x8] sm:$0xff] %v6175_v46  ;;  %5281 = vst [vmem:[%s8282_s23 + $0x18] sm:$0xff] %v6177_v49 }
 0x3ea   : > { %v6070_v32 = vpop.f32.mrb[12].mxu1 }
 0x3eb   : > { %v6136_v59 = vpop.f32.mrb[16].mxu0  ;;  %v6071_v58 = vpop.f32.mrb[13].mxu1 }
 0x3ec   : > { %v6072_v61 = vadd.f32 %v6071_v58, %v6070_v32  ;;  %v6137_v56 = vpop.f32.mrb[17].mxu0  ;;  %v6073_v17 = vpop.f32.mrb[14].mxu1 }
 0x3ed   : > { %v6138_v18 = vadd.f32 %v6137_v56, %v6136_v59  ;;  %v6139_v4 = vpop.f32.mrb[18].mxu0  ;;  %v6074_v62 = vpop.f32.mrb[15].mxu1 }
 0x3ee   : > { %v6140_v63 = vpop.f32.mrb[19].mxu0  ;;  %v5113_v2 = vadd.f32 %v6072_v61, %v2582_v1 }
 0x40a   : > { %v6092_v3 = vpop.f32.mrb[16].mxu1 }
 0x40b   : > { %v6093_v5 = vpop.f32.mrb[17].mxu1 }
 0x40c   : > { %v6094_v9 = vadd.f32 %v6093_v5, %v6092_v3  ;;  %v6095_v60 = vpop.f32.mrb[18].mxu1 }
 0x40d   : > { %v6096_v7 = vpop.f32.mrb[19].mxu1 }
 0x40e   : > { %v5153_v11 = vadd.f32 %v6094_v9, %v5113_v2 }
 0x42a   : > { %v6114_v13 = vpop.f32.mrb[20].mxu1 }
 0x42b   : > { %v6115_v14 = vpop.f32.mrb[21].mxu1 }
 0x42c   : > { %v6116_v19 = vadd.f32 %v6115_v14, %v6114_v13  ;;  %v6117_v34 = vpop.f32.mrb[22].mxu1 }
 0x42d   : > { %v6118_v22 = vpop.f32.mrb[23].mxu1 }
 0x42e   : > { %v5193_v52 = vadd.f32 %v6116_v19, %v5153_v11 }
 0x430   : > { %v5233_v12 = vadd.f32 %v6138_v18, %v5193_v52 }
 0x44a   : > { %v6158_v0 = vpop.f32.mrb[24].mxu1 }
 0x44b   : > { %v6159_v37 = vpop.f32.mrb[25].mxu1 }
 0x44c   : > { %v6160_v25 = vadd.f32 %v6159_v37, %v6158_v0  ;;  %v6161_v23 = vpop.f32.mrb[26].mxu1 }
 0x44d   : > { %v6162_v26 = vpop.f32.mrb[27].mxu1 }
 0x44e   : > { %v5273_v27 = vadd.f32 %v6160_v25, %v5233_v12 }
 0x450   : > { %5282 = vst [vmem:[%s8282_s23 + $0x20] sm:$0xff] %v5273_v27 }
 0x451   : > { %7385 = shalt.err (!%p7382_p7)
}
 0x452   : > { %s7386_s11 = scalar_lea.hbm %s8295_s15, 640  ;;  %s7390_s16 = scalar_lea.hbm %s8345_s5, 1280 }
 0x453   : > { %p7387_p11 = scmp.ne.s32.totalorder %s8295_s15, %s7386_s11  ;;  %p7391_p12 = scmp.lt.u32.totalorder %s8295_s15, %s8345_s5 }
 0x454   : > { %p7392_p1 = scmp.lt.u32.totalorder %s7390_s16, %s7386_s11  ;;  %p7394_p6 = scmp.lt.u32.totalorder %s7386_s11, %s8295_s15 }
 0x455   : > { %p7388_p2 = pnand %p7387_p11, %p8385_p10 }
 0x456   : > { %p7393_p8 = por %p7392_p1, %p7391_p12 }
 0x457   : > { %p7389_p5 = pneg %p7388_p2 }
 0x458   : > { %p7395_p3 = por %p7394_p6, %p7393_p8 }
 0x45a   : > { %p7396_p13 = pnand %p7395_p3, %p7389_p5 }
 0x45c   : > { %7399 = shalt.err (!%p7396_p13)
}
 0x45d   : > { %6252 = dma.vmem_to_hbm [thread:$0]  (%p8385_p10), %s8297_s12, 640, %s8295_s15, %s5284_s7  }
 0x45e PF: > { %s8386_s6 = sld [smem:[#allocation16_spill]]  ;;  %s5310_s3 = sand.u32 1, %s7434_s18  }
 0x45f   : > { %p8388_p0 = scmp.ge.s32.totalorder %s7446_s21, 2  ;;  %s5311_s24 = scalar_lea.sflag [#allocation4], %s5310_s3 }
 0x464   : > { %p8387_p9 = scmp.ne.s32.totalorder %s8386_s6, 0 }
 0x466   : > { %p6272_p4 = pnand %p8388_p0, %p8387_p9 }
 0x468   : > { %7429 = dma.done.wait (!%p6272_p4), %s5311_s24, 640  }
 0x469   : > { %7431 = vsyncadd (!%p6272_p4), %s5311_s24, 4294966656  ;;  %s8389_s21 = sld [smem:[#allocation17_spill]]  ;;  %s8390_s9 = sld [smem:[#allocation18_spill]] }
 0x46a   : > { %s8391_s18 = smov %s7438_s19  ;;  %s8392_s19 = smov %s7442_s20 }
 0x46f   : > { %p20_p7 = scmp.ge.s32.totalorder %s8389_s21, 4   ;;  %s8393_s20 = smov %s8390_s9 }
 0x471   :  { %22 = sbr.rel (!%p20_p7) target bundleno = 10 (0xa), region = 109 }
 0x478   :  { %5316 = vsyncpa [#allocation3], 1 }
 0x479   :  { %5318 = vsyncpa [#allocation3 + $0x1], 1 }
 0x47a   :  { %5319 = vsyncpa [#allocation6], 1 }
 0x47b   :  { %5320 = vsyncpa [#allocation9], 1 }
 0x47c   :  { %5322 = vsyncpa [#allocation9 + $0x1], 1 }
 0x47d   :  { %5323 = vsyncpa [#allocation4], 1 }
 0x47e   :  { %5325 = vsyncpa [#allocation4 + $0x1], 1 }

</bundles_post_ra>
